<compile_context>
chip_gen: v7x
topology: tpu7x:2x2x1
jax: 0.10.0
libtpu: 0.0.40
codegen_flags: <defaults>
</compile_context>

<pallas_src>
import functools

import jax
import jax.numpy as jnp
from jax import lax
from jax.experimental import pallas as pl
from jax.experimental.pallas import tpu as pltpu


# ---------------------------------------------------------------------------
# Kernel: one EncoderLayer per grid step (layer axis), whole batch tile at once.
# ---------------------------------------------------------------------------
def _transformer_kernel(mask_ref, x_ref,
                        wqkv_ref, bqkv_ref, wo_ref, bo_ref,
                        g1_ref, be1_ref, w1_ref, b1_ref, w2_ref, b2_ref,
                        g2_ref, be2_ref,
                        o_ref, *,
                        batch_tile, seq_len, num_heads, d_attn, ln_eps):
    layer = pl.program_id(1)
    mxu_dt = wqkv_ref.dtype            # bf16 by default (f32 if requested)

    # At the first layer of this batch tile, seed the resident activation
    # (the output block is revisited across the layer axis, so it lives in
    # VMEM for the whole layer sweep and is written back to HBM only once).
    @pl.when(layer == 0)
    def _():
        o_ref[...] = x_ref[...]

    x = o_ref[...]                                    # (Bt*S, D) f32
    D = x.shape[-1]

    def mm(a, w_ref_or_arr):
        w = w_ref_or_arr[...] if hasattr(w_ref_or_arr, "at") else w_ref_or_arr
        return jnp.dot(a.astype(mxu_dt), w, preferred_element_type=jnp.float32)

    # ---- Fused QKV projection: one (Bt*S, D) @ (D, 3D) matmul ------------
    # Query block of wqkv/bqkv is pre-scaled by 1/sqrt(d_attn) in the wrapper.
    qkv = mm(x, wqkv_ref) + bqkv_ref[...]             # (Bt*S, 3D) f32

    mask_add = mask_ref[...]                          # (1, S) additive mask

    # ---- Attention: per (batch, head) softmax(QK^T)V ----------------------
    # Head outputs are concatenated back to (Bt*S, D) so the output
    # projection below is a single full-K matmul.
    ctx_rows = []
    for b in range(batch_tile):
        r0 = b * seq_len
        q_b = qkv[r0:r0 + seq_len, 0 * D:1 * D]
        k_b = qkv[r0:r0 + seq_len, 1 * D:2 * D]
        v_b = qkv[r0:r0 + seq_len, 2 * D:3 * D]
        head_outs = []
        for h in range(num_heads):
            lo = h * d_attn
            hi = lo + d_attn
            qh = q_b[:, lo:hi].astype(mxu_dt)
            kh = k_b[:, lo:hi].astype(mxu_dt)
            vh = v_b[:, lo:hi].astype(mxu_dt)
            # scores = (q/sqrt(d)) @ k^T  (scale already folded into q)
            s = lax.dot_general(qh, kh, (((1,), (1,)), ((), ())),
                                preferred_element_type=jnp.float32)
            s = s + mask_add                          # masked keys -> -1e30
            m = jnp.max(s, axis=-1, keepdims=True)
            p = jnp.exp(s - m)
            denom = jnp.sum(p, axis=-1, keepdims=True)
            p = p * pl.reciprocal(denom, approx=True)  # EUP reciprocal
            head_outs.append(mm(p, vh))               # (S, d_attn) f32
        ctx_rows.append(jnp.concatenate(head_outs, axis=-1))     # (S, D)
    ctx = ctx_rows[0] if batch_tile == 1 else jnp.concatenate(ctx_rows, axis=0)

    # ---- Single full-K output projection + residual + LayerNorm 1 ---------
    attn_out = mm(ctx, wo_ref) + bo_ref[...]
    h1 = attn_out + x
    mu = jnp.mean(h1, axis=-1, keepdims=True)
    xc = h1 - mu
    var = jnp.mean(xc * xc, axis=-1, keepdims=True)
    h1 = xc * lax.rsqrt(var + ln_eps) * g1_ref[...] + be1_ref[...]

    # ---- Feed-forward: Linear -> ReLU -> Linear ----------------------------
    f = mm(h1, w1_ref) + b1_ref[...]
    f = jnp.maximum(f, 0.0)
    f = mm(f, w2_ref) + b2_ref[...]

    # ---- Residual + LayerNorm 2 -> new resident activation ----------------
    h2 = f + h1
    mu2 = jnp.mean(h2, axis=-1, keepdims=True)
    xc2 = h2 - mu2
    var2 = jnp.mean(xc2 * xc2, axis=-1, keepdims=True)
    o_ref[...] = (xc2 * lax.rsqrt(var2 + ln_eps) * g2_ref[...] + be2_ref[...]
                  ).astype(o_ref.dtype)


# ---------------------------------------------------------------------------
# Wrapper
# ---------------------------------------------------------------------------
def transformer_forward(x, fused, mask=None, *, num_heads, ln_eps=1e-5,
                        batch_tile=None):
    """x: (B, S, D); fused: layer-stacked fused params; mask: 1-D key mask
    (0 => masked), as in Transformer.forward."""
    B, S, D = x.shape
    L = fused["wqkv"].shape[0]
    F = fused["w1"].shape[-1]
    d_attn = D // num_heads

    # One batch tile by default: maximizes MXU M rows (Bt*S) per matmul.
    # Use >=2 tiles (batch_tile = B // 2) when B is large to feed both v7x TCs.
    if batch_tile is None:
        batch_tile = B
    assert B % batch_tile == 0
    nb = B // batch_tile
    rows = batch_tile * S

    if mask is None:
        mask_add = jnp.zeros((1, S), jnp.float32)
    else:
        mask_add = jnp.where(mask.reshape(1, S) == 0,
                             jnp.float32(-1e30), jnp.float32(0.0))

    x2 = x.reshape(B * S, D).astype(jnp.float32)

    kernel = functools.partial(_transformer_kernel,
                               batch_tile=batch_tile, seq_len=S,
                               num_heads=num_heads, d_attn=d_attn,
                               ln_eps=ln_eps)

    def w_spec(shape):
        # Layer-stacked parameter: indexed by the layer grid axis.
        return pl.BlockSpec((pl.Squeezed(),) + shape,
                            lambda b, l: (l,) + (0,) * len(shape))

    grid_spec = pltpu.PrefetchScalarGridSpec(
        num_scalar_prefetch=0,
        grid=(nb, L),
        in_specs=[
            pl.BlockSpec((1, S), lambda b, l: (0, 0)),      # additive mask
            pl.BlockSpec((rows, D), lambda b, l: (b, 0)),   # x rows
            w_spec((D, 3 * D)),     # wqkv  (bf16, q block pre-scaled)
            w_spec((1, 3 * D)),     # bqkv
            w_spec((D, D)),         # wo    (bf16)
            w_spec((1, D)),         # bo
            w_spec((1, D)),         # ln1 gamma
            w_spec((1, D)),         # ln1 beta
            w_spec((D, F)),         # w1    (bf16)
            w_spec((1, F)),         # b1
            w_spec((F, D)),         # w2    (bf16)
            w_spec((1, D)),         # b2
            w_spec((1, D)),         # ln2 gamma
            w_spec((1, D)),         # ln2 beta
        ],
        out_specs=pl.BlockSpec((rows, D), lambda b, l: (b, 0)),
    )

    out = pl.pallas_call(
        kernel,
        out_shape=jax.ShapeDtypeStruct((B * S, D), jnp.float32),
        grid_spec=grid_spec,
        compiler_params=pltpu.CompilerParams(
            dimension_semantics=("parallel", "arbitrary"),
            vmem_limit_bytes=32 * 1024 * 1024),
    )(mask_add, x2,
      fused["wqkv"], fused["bqkv"], fused["wo"], fused["bo"],
      fused["g1"], fused["be1"], fused["w1"], fused["b1"],
      fused["w2"], fused["b2"], fused["g2"], fused["be2"])
    return out.reshape(B, S, D)


# ---------------------------------------------------------------------------
# Parameter construction (torch-Linear-equivalent, stored transposed) + fusion
# ---------------------------------------------------------------------------
def init_transformer_params(key, num_layers, d_model, num_heads, ffwd_dim):
    d_attn = d_model // num_heads

    def linear(k, fan_in, fan_out):
        k1, k2 = jax.random.split(k)
        bound = 1.0 / (fan_in ** 0.5)
        w = jax.random.uniform(k1, (fan_in, fan_out), jnp.float32, -bound, bound)
        b = jax.random.uniform(k2, (fan_out,), jnp.float32, -bound, bound)
        return w, b

    layers = []
    for lk in jax.random.split(key, num_layers):
        hk = jax.random.split(lk, 3 * num_heads + 7)
        heads = []
        for h in range(num_heads):
            wq, bq = linear(hk[3 * h + 0], d_model, d_attn)
            wk_, bk_ = linear(hk[3 * h + 1], d_model, d_attn)
            wv, bv = linear(hk[3 * h + 2], d_model, d_attn)
            heads.append((wq, bq, wk_, bk_, wv, bv))
        base = 3 * num_heads
        wo, bo = linear(hk[base + 0], d_model, d_model)
        w1, b1 = linear(hk[base + 1], d_model, ffwd_dim)
        w2, b2 = linear(hk[base + 2], ffwd_dim, d_model)
        # LayerNorm params (randomized for a stronger test; torch default is
        # ones/zeros but the forward is parameter-agnostic).
        g1 = jax.random.uniform(hk[base + 3], (d_model,), jnp.float32, 0.9, 1.1)
        be1 = jax.random.uniform(hk[base + 4], (d_model,), jnp.float32, -0.1, 0.1)
        g2 = jax.random.uniform(hk[base + 5], (d_model,), jnp.float32, 0.9, 1.1)
        be2 = jax.random.uniform(hk[base + 6], (d_model,), jnp.float32, -0.1, 0.1)
        layers.append(dict(heads=heads, wo=wo, bo=bo, g1=g1, be1=be1,
                           w1=w1, b1=b1, w2=w2, b2=b2, g2=g2, be2=be2))
    return layers


def fuse_transformer_params(raw_layers, num_heads, d_attn,
                            weight_dtype=jnp.bfloat16):
    """Per layer: concat per-head q/k/v Linears into one (D, 3D) weight with
    1/sqrt(d_attn) folded into the query block; cast matmul weights to
    `weight_dtype`; stack all layers along a leading layer axis."""
    inv_scale = jnp.float32(1.0 / (d_attn ** 0.5))

    def per_layer(lp):
        wq = jnp.concatenate([h[0] for h in lp["heads"]], axis=1) * inv_scale
        bq = jnp.concatenate([h[1] for h in lp["heads"]]) * inv_scale
        wk = jnp.concatenate([h[2] for h in lp["heads"]], axis=1)
        bk = jnp.concatenate([h[3] for h in lp["heads"]])
        wv = jnp.concatenate([h[4] for h in lp["heads"]], axis=1)
        bv = jnp.concatenate([h[5] for h in lp["heads"]])
        wqkv = jnp.concatenate([wq, wk, wv], axis=1)
        bqkv = jnp.concatenate([bq, bk, bv]).reshape(1, -1)
        r = lambda a: a.reshape(1, -1)
        return dict(wqkv=wqkv.astype(weight_dtype), bqkv=bqkv,
                    wo=lp["wo"].astype(weight_dtype), bo=r(lp["bo"]),
                    g1=r(lp["g1"]), be1=r(lp["be1"]),
                    w1=lp["w1"].astype(weight_dtype), b1=r(lp["b1"]),
                    w2=lp["w2"].astype(weight_dtype), b2=r(lp["b2"]),
                    g2=r(lp["g2"]), be2=r(lp["be2"]))

    per = [per_layer(lp) for lp in raw_layers]
    return {k: jnp.stack([p[k] for p in per], axis=0) for k in per[0]}


# ---------------------------------------------------------------------------
# Pure-JAX reference (mirrors the torch module exactly, full-f32 matmuls)
# ---------------------------------------------------------------------------
def _layer_norm_ref(x, g, b, eps):
    mu = jnp.mean(x, axis=-1, keepdims=True)
    var = jnp.mean(jnp.square(x - mu), axis=-1, keepdims=True)
    return (x - mu) / jnp.sqrt(var + eps) * g + b


def _reference_forward(x, raw_layers, mask=None, ln_eps=1e-5):
    hp = lax.Precision.HIGHEST
    dot = functools.partial(jnp.dot, precision=hp)
    B, S, _ = x.shape
    for lp in raw_layers:
        heads = []
        for (wq, bq, wk_, bk_, wv, bv) in lp["heads"]:
            q = dot(x, wq) + bq
            k = dot(x, wk_) + bk_
            v = dot(x, wv) + bv
            scale = k.shape[-1] ** 0.5
            attn = jnp.einsum("bqd,bkd->bqk", q, k, precision=hp) / scale
            if mask is not None:
                attn = jnp.where(mask.reshape(1, 1, S) == 0, -jnp.inf, attn)
            attn = jax.nn.softmax(attn, axis=-1)
            heads.append(jnp.einsum("bqk,bkd->bqd", attn, v, precision=hp))
        a = dot(jnp.concatenate(heads, axis=-1), lp["wo"]) + lp["bo"]
        x = _layer_norm_ref(a + x, lp["g1"], lp["be1"], ln_eps)
        f = dot(jnp.maximum(dot(x, lp["w1"]) + lp["b1"], 0.0), lp["w2"]) + lp["b2"]
        x = _layer_norm_ref(f + x, lp["g2"], lp["be2"], ln_eps)
    return x


# ---------------------------------------------------------------------------
# Self-test
# ---------------------------------------------------------------------------
if __name__ == "__main__":
    B, S = 2, 8
    d_model, num_heads, ffwd_dim, num_layers = 128, 4, 256, 2
    d_attn = d_model // num_heads

    key = jax.random.PRNGKey(0)
    kx, kp = jax.random.split(key)
    x = jax.random.normal(kx, (B, S, d_model), dtype=jnp.float32)

    raw = init_transformer_params(kp, num_layers, d_model, num_heads, ffwd_dim)
    fused = fuse_transformer_params(raw, num_heads, d_attn)   # bf16 matmul weights

    # Key mask: last two tokens masked out (0 == masked), as in Transformer.forward.
    mask = jnp.array([1] * (S - 2) + [0, 0], dtype=jnp.int32)

    out = jax.block_until_ready(transformer_forward(x, fused, mask, num_heads=num_heads))
    ref = _reference_forward(x, raw, mask)
    assert out.shape == (B, S, d_model)
    # Tolerance covers bf16 MXU inputs (f32 accumulate) and the EUP approximate
    # reciprocal in the in-kernel softmax, vs. the full-f32 reference.
    assert jnp.allclose(out, ref, atol=5e-2, rtol=5e-2), "mismatch vs JAX reference"

    # mask=None path (matches torch forward with mask=None).
    out2 = jax.block_until_ready(transformer_forward(x, fused, None, num_heads=num_heads))
    ref2 = _reference_forward(x, raw, None)
    assert jnp.allclose(out2, ref2, atol=5e-2, rtol=5e-2), "mismatch (no mask)"

    print("KERNEL_OK")
</pallas_src>

<mosaic_0001>
module attributes {stable_mosaic.version = 11 : i64} {
  func.func @_transformer_kernel(%arg0: i32, %arg1: i32, %arg2: memref<1x8xf32, #tpu.memory_space<vmem>>, %arg3: memref<16x128xf32, #tpu.memory_space<vmem>>, %arg4: memref<1x128x384xbf16, #tpu.memory_space<vmem>>, %arg5: memref<1x1x384xf32, #tpu.memory_space<vmem>>, %arg6: memref<1x128x128xbf16, #tpu.memory_space<vmem>>, %arg7: memref<1x1x128xf32, #tpu.memory_space<vmem>>, %arg8: memref<1x1x128xf32, #tpu.memory_space<vmem>>, %arg9: memref<1x1x128xf32, #tpu.memory_space<vmem>>, %arg10: memref<1x128x256xbf16, #tpu.memory_space<vmem>>, %arg11: memref<1x1x256xf32, #tpu.memory_space<vmem>>, %arg12: memref<1x256x128xbf16, #tpu.memory_space<vmem>>, %arg13: memref<1x1x128xf32, #tpu.memory_space<vmem>>, %arg14: memref<1x1x128xf32, #tpu.memory_space<vmem>>, %arg15: memref<1x1x128xf32, #tpu.memory_space<vmem>>, %arg16: memref<16x128xf32, #tpu.memory_space<vmem>>) attributes {dimension_semantics = [#tpu.dimension_semantics<parallel>, #tpu.dimension_semantics<arbitrary>], iteration_bounds = array<i64: 1, 2>, scalar_prefetch = 0 : i64, scratch_operands = 0 : i64, tpu.core_type = #tpu.core_type<tc>, window_params = [{pipeline_mode = #tpu.pipeline_mode<synchronous>, transform_indices = @transform_0, window_bounds = array<i64: 1, 8>}, {transform_indices = @transform_1, window_bounds = array<i64: 16, 128>}, {transform_indices = @transform_2, window_bounds = array<i64: 1, 128, 384>}, {transform_indices = @transform_3, window_bounds = array<i64: 1, 1, 384>}, {transform_indices = @transform_4, window_bounds = array<i64: 1, 128, 128>}, {transform_indices = @transform_5, window_bounds = array<i64: 1, 1, 128>}, {transform_indices = @transform_6, window_bounds = array<i64: 1, 1, 128>}, {transform_indices = @transform_7, window_bounds = array<i64: 1, 1, 128>}, {transform_indices = @transform_8, window_bounds = array<i64: 1, 128, 256>}, {transform_indices = @transform_9, window_bounds = array<i64: 1, 1, 256>}, {transform_indices = @transform_10, window_bounds = array<i64: 1, 256, 128>}, {transform_indices = @transform_11, window_bounds = array<i64: 1, 1, 128>}, {transform_indices = @transform_12, window_bounds = array<i64: 1, 1, 128>}, {transform_indices = @transform_13, window_bounds = array<i64: 1, 1, 128>}, {transform_indices = @transform_14, window_bounds = array<i64: 16, 128>}]} {
    %c0_i32 = arith.constant 0 : i32
    %0 = arith.cmpi eq, %arg1, %c0_i32 : i32
    %1 = arith.extui %0 : i1 to i32
    %c0_i32_0 = arith.constant 0 : i32
    %2 = arith.cmpi ne, %1, %c0_i32_0 : i32
    scf.if %2 {
      %c0_88 = arith.constant 0 : index
      %c0_89 = arith.constant 0 : index
      %267 = vector.load %arg3[%c0_88, %c0_89] : memref<16x128xf32, #tpu.memory_space<vmem>>, vector<16x128xf32>
      %c0_90 = arith.constant 0 : index
      %c0_91 = arith.constant 0 : index
      %268 = vector.load %arg16[%c0_90, %c0_91] : memref<16x128xf32, #tpu.memory_space<vmem>>, vector<16x128xf32>
      tpu.vector_store %arg16[%c0_90, %c0_91], %267 {strides = array<i32>} : memref<16x128xf32, #tpu.memory_space<vmem>>, vector<16x128xf32>,
    } else {
    }
    %c0 = arith.constant 0 : index
    %c0_1 = arith.constant 0 : index
    %3 = vector.load %arg16[%c0, %c0_1] : memref<16x128xf32, #tpu.memory_space<vmem>>, vector<16x128xf32>
    %c0_2 = arith.constant 0 : index
    %c0_3 = arith.constant 0 : index
    %c0_4 = arith.constant 0 : index
    %4 = vector.load %arg4[%c0_2, %c0_3, %c0_4] : memref<1x128x384xbf16, #tpu.memory_space<vmem>>, vector<1x128x384xbf16>
    %5 = vector.shape_cast %4 : vector<1x128x384xbf16> to vector<128x384xbf16>
    %6 = arith.truncf %3 : vector<16x128xf32> to vector<16x128xbf16>
    %cst = arith.constant dense<0.000000e+00> : vector<16x384xf32>
    %7 = tpu.matmul %6, %5, %cst {dimension_numbers = #tpu.dot_dimension_numbers<[1], [0], [0], [1], [0, 0, 1, 1], [], []>} : vector<16x128xbf16>, vector<128x384xbf16>, vector<16x384xf32> -> vector<16x384xf32>
    %c0_5 = arith.constant 0 : index
    %c0_6 = arith.constant 0 : index
    %c0_7 = arith.constant 0 : index
    %8 = vector.load %arg5[%c0_5, %c0_6, %c0_7] : memref<1x1x384xf32, #tpu.memory_space<vmem>>, vector<1x1x384xf32>
    %9 = vector.shape_cast %8 : vector<1x1x384xf32> to vector<1x384xf32>
    %10 = vector.broadcast %9 : vector<1x384xf32> to vector<16x384xf32>
    %11 = arith.addf %7, %10 : vector<16x384xf32>
    %c0_8 = arith.constant 0 : index
    %c0_9 = arith.constant 0 : index
    %12 = vector.load %arg2[%c0_8, %c0_9] : memref<1x8xf32, #tpu.memory_space<vmem>>, vector<1x8xf32>
    %13 = vector.extract_strided_slice %11 {offsets = [0, 0], sizes = [8, 128], strides = [1, 1]} : vector<16x384xf32> to vector<8x128xf32>
    %14 = vector.extract_strided_slice %11 {offsets = [0, 128], sizes = [8, 128], strides = [1, 1]} : vector<16x384xf32> to vector<8x128xf32>
    %15 = vector.extract_strided_slice %11 {offsets = [0, 256], sizes = [8, 128], strides = [1, 1]} : vector<16x384xf32> to vector<8x128xf32>
    %16 = vector.extract_strided_slice %13 {offsets = [0, 0], sizes = [8, 32], strides = [1, 1]} : vector<8x128xf32> to vector<8x32xf32>
    %17 = arith.truncf %16 : vector<8x32xf32> to vector<8x32xbf16>
    %18 = vector.extract_strided_slice %14 {offsets = [0, 0], sizes = [8, 32], strides = [1, 1]} : vector<8x128xf32> to vector<8x32xf32>
    %19 = arith.truncf %18 : vector<8x32xf32> to vector<8x32xbf16>
    %20 = vector.extract_strided_slice %15 {offsets = [0, 0], sizes = [8, 32], strides = [1, 1]} : vector<8x128xf32> to vector<8x32xf32>
    %21 = arith.truncf %20 : vector<8x32xf32> to vector<8x32xbf16>
    %cst_10 = arith.constant dense<0.000000e+00> : vector<8x8xf32>
    %22 = tpu.matmul %17, %19, %cst_10 {dimension_numbers = #tpu.dot_dimension_numbers<[1], [1], [0], [0], [0, 0, 1, 0], [], []>} : vector<8x32xbf16>, vector<8x32xbf16>, vector<8x8xf32> -> vector<8x8xf32>
    %23 = vector.broadcast %12 : vector<1x8xf32> to vector<8x8xf32>
    %24 = arith.addf %22, %23 : vector<8x8xf32>
    %cst_11 = arith.constant dense<0xFF800000> : vector<8xf32>
    %25 = vector.multi_reduction <maximumf>, %24, %cst_11 [1] : vector<8x8xf32> to vector<8xf32>
    %26 = vector.shape_cast %25 : vector<8xf32> to vector<8x1xf32>
    %27 = vector.broadcast %26 : vector<8x1xf32> to vector<8x8xf32>
    %28 = arith.subf %24, %27 : vector<8x8xf32>
    %29 = math.exp %28 : vector<8x8xf32>
    %cst_12 = arith.constant dense<0.000000e+00> : vector<8xf32>
    %30 = vector.multi_reduction <add>, %29, %cst_12 [1] : vector<8x8xf32> to vector<8xf32>
    %31 = vector.shape_cast %30 : vector<8xf32> to vector<8x1xf32>
    %32 = tpu.reciprocal %31 {approx = true} : vector<8x1xf32> -> vector<8x1xf32>
    %33 = vector.broadcast %32 : vector<8x1xf32> to vector<8x8xf32>
    %34 = arith.mulf %29, %33 : vector<8x8xf32>
    %35 = arith.truncf %34 : vector<8x8xf32> to vector<8x8xbf16>
    %cst_13 = arith.constant dense<0.000000e+00> : vector<8x32xf32>
    %36 = tpu.matmul %35, %21, %cst_13 {dimension_numbers = #tpu.dot_dimension_numbers<[1], [0], [0], [1], [0, 0, 1, 1], [], []>} : vector<8x8xbf16>, vector<8x32xbf16>, vector<8x32xf32> -> vector<8x32xf32>
    %37 = vector.extract_strided_slice %13 {offsets = [0, 32], sizes = [8, 32], strides = [1, 1]} : vector<8x128xf32> to vector<8x32xf32>
    %38 = arith.truncf %37 : vector<8x32xf32> to vector<8x32xbf16>
    %39 = vector.extract_strided_slice %14 {offsets = [0, 32], sizes = [8, 32], strides = [1, 1]} : vector<8x128xf32> to vector<8x32xf32>
    %40 = arith.truncf %39 : vector<8x32xf32> to vector<8x32xbf16>
    %41 = vector.extract_strided_slice %15 {offsets = [0, 32], sizes = [8, 32], strides = [1, 1]} : vector<8x128xf32> to vector<8x32xf32>
    %42 = arith.truncf %41 : vector<8x32xf32> to vector<8x32xbf16>
    %cst_14 = arith.constant dense<0.000000e+00> : vector<8x8xf32>
    %43 = tpu.matmul %38, %40, %cst_14 {dimension_numbers = #tpu.dot_dimension_numbers<[1], [1], [0], [0], [0, 0, 1, 0], [], []>} : vector<8x32xbf16>, vector<8x32xbf16>, vector<8x8xf32> -> vector<8x8xf32>
    %44 = vector.broadcast %12 : vector<1x8xf32> to vector<8x8xf32>
    %45 = arith.addf %43, %44 : vector<8x8xf32>
    %cst_15 = arith.constant dense<0xFF800000> : vector<8xf32>
    %46 = vector.multi_reduction <maximumf>, %45, %cst_15 [1] : vector<8x8xf32> to vector<8xf32>
    %47 = vector.shape_cast %46 : vector<8xf32> to vector<8x1xf32>
    %48 = vector.broadcast %47 : vector<8x1xf32> to vector<8x8xf32>
    %49 = arith.subf %45, %48 : vector<8x8xf32>
    %50 = math.exp %49 : vector<8x8xf32>
    %cst_16 = arith.constant dense<0.000000e+00> : vector<8xf32>
    %51 = vector.multi_reduction <add>, %50, %cst_16 [1] : vector<8x8xf32> to vector<8xf32>
    %52 = vector.shape_cast %51 : vector<8xf32> to vector<8x1xf32>
    %53 = tpu.reciprocal %52 {approx = true} : vector<8x1xf32> -> vector<8x1xf32>
    %54 = vector.broadcast %53 : vector<8x1xf32> to vector<8x8xf32>
    %55 = arith.mulf %50, %54 : vector<8x8xf32>
    %56 = arith.truncf %55 : vector<8x8xf32> to vector<8x8xbf16>
    %cst_17 = arith.constant dense<0.000000e+00> : vector<8x32xf32>
    %57 = tpu.matmul %56, %42, %cst_17 {dimension_numbers = #tpu.dot_dimension_numbers<[1], [0], [0], [1], [0, 0, 1, 1], [], []>} : vector<8x8xbf16>, vector<8x32xbf16>, vector<8x32xf32> -> vector<8x32xf32>
    %58 = vector.extract_strided_slice %13 {offsets = [0, 64], sizes = [8, 32], strides = [1, 1]} : vector<8x128xf32> to vector<8x32xf32>
    %59 = arith.truncf %58 : vector<8x32xf32> to vector<8x32xbf16>
    %60 = vector.extract_strided_slice %14 {offsets = [0, 64], sizes = [8, 32], strides = [1, 1]} : vector<8x128xf32> to vector<8x32xf32>
    %61 = arith.truncf %60 : vector<8x32xf32> to vector<8x32xbf16>
    %62 = vector.extract_strided_slice %15 {offsets = [0, 64], sizes = [8, 32], strides = [1, 1]} : vector<8x128xf32> to vector<8x32xf32>
    %63 = arith.truncf %62 : vector<8x32xf32> to vector<8x32xbf16>
    %cst_18 = arith.constant dense<0.000000e+00> : vector<8x8xf32>
    %64 = tpu.matmul %59, %61, %cst_18 {dimension_numbers = #tpu.dot_dimension_numbers<[1], [1], [0], [0], [0, 0, 1, 0], [], []>} : vector<8x32xbf16>, vector<8x32xbf16>, vector<8x8xf32> -> vector<8x8xf32>
    %65 = vector.broadcast %12 : vector<1x8xf32> to vector<8x8xf32>
    %66 = arith.addf %64, %65 : vector<8x8xf32>
    %cst_19 = arith.constant dense<0xFF800000> : vector<8xf32>
    %67 = vector.multi_reduction <maximumf>, %66, %cst_19 [1] : vector<8x8xf32> to vector<8xf32>
    %68 = vector.shape_cast %67 : vector<8xf32> to vector<8x1xf32>
    %69 = vector.broadcast %68 : vector<8x1xf32> to vector<8x8xf32>
    %70 = arith.subf %66, %69 : vector<8x8xf32>
    %71 = math.exp %70 : vector<8x8xf32>
    %cst_20 = arith.constant dense<0.000000e+00> : vector<8xf32>
    %72 = vector.multi_reduction <add>, %71, %cst_20 [1] : vector<8x8xf32> to vector<8xf32>
    %73 = vector.shape_cast %72 : vector<8xf32> to vector<8x1xf32>
    %74 = tpu.reciprocal %73 {approx = true} : vector<8x1xf32> -> vector<8x1xf32>
    %75 = vector.broadcast %74 : vector<8x1xf32> to vector<8x8xf32>
    %76 = arith.mulf %71, %75 : vector<8x8xf32>
    %77 = arith.truncf %76 : vector<8x8xf32> to vector<8x8xbf16>
    %cst_21 = arith.constant dense<0.000000e+00> : vector<8x32xf32>
    %78 = tpu.matmul %77, %63, %cst_21 {dimension_numbers = #tpu.dot_dimension_numbers<[1], [0], [0], [1], [0, 0, 1, 1], [], []>} : vector<8x8xbf16>, vector<8x32xbf16>, vector<8x32xf32> -> vector<8x32xf32>
    %79 = vector.extract_strided_slice %13 {offsets = [0, 96], sizes = [8, 32], strides = [1, 1]} : vector<8x128xf32> to vector<8x32xf32>
    %80 = arith.truncf %79 : vector<8x32xf32> to vector<8x32xbf16>
    %81 = vector.extract_strided_slice %14 {offsets = [0, 96], sizes = [8, 32], strides = [1, 1]} : vector<8x128xf32> to vector<8x32xf32>
    %82 = arith.truncf %81 : vector<8x32xf32> to vector<8x32xbf16>
    %83 = vector.extract_strided_slice %15 {offsets = [0, 96], sizes = [8, 32], strides = [1, 1]} : vector<8x128xf32> to vector<8x32xf32>
    %84 = arith.truncf %83 : vector<8x32xf32> to vector<8x32xbf16>
    %cst_22 = arith.constant dense<0.000000e+00> : vector<8x8xf32>
    %85 = tpu.matmul %80, %82, %cst_22 {dimension_numbers = #tpu.dot_dimension_numbers<[1], [1], [0], [0], [0, 0, 1, 0], [], []>} : vector<8x32xbf16>, vector<8x32xbf16>, vector<8x8xf32> -> vector<8x8xf32>
    %86 = vector.broadcast %12 : vector<1x8xf32> to vector<8x8xf32>
    %87 = arith.addf %85, %86 : vector<8x8xf32>
    %cst_23 = arith.constant dense<0xFF800000> : vector<8xf32>
    %88 = vector.multi_reduction <maximumf>, %87, %cst_23 [1] : vector<8x8xf32> to vector<8xf32>
    %89 = vector.shape_cast %88 : vector<8xf32> to vector<8x1xf32>
    %90 = vector.broadcast %89 : vector<8x1xf32> to vector<8x8xf32>
    %91 = arith.subf %87, %90 : vector<8x8xf32>
    %92 = math.exp %91 : vector<8x8xf32>
    %cst_24 = arith.constant dense<0.000000e+00> : vector<8xf32>
    %93 = vector.multi_reduction <add>, %92, %cst_24 [1] : vector<8x8xf32> to vector<8xf32>
    %94 = vector.shape_cast %93 : vector<8xf32> to vector<8x1xf32>
    %95 = tpu.reciprocal %94 {approx = true} : vector<8x1xf32> -> vector<8x1xf32>
    %96 = vector.broadcast %95 : vector<8x1xf32> to vector<8x8xf32>
    %97 = arith.mulf %92, %96 : vector<8x8xf32>
    %98 = arith.truncf %97 : vector<8x8xf32> to vector<8x8xbf16>
    %cst_25 = arith.constant dense<0.000000e+00> : vector<8x32xf32>
    %99 = tpu.matmul %98, %84, %cst_25 {dimension_numbers = #tpu.dot_dimension_numbers<[1], [0], [0], [1], [0, 0, 1, 1], [], []>} : vector<8x8xbf16>, vector<8x32xbf16>, vector<8x32xf32> -> vector<8x32xf32>
    %100 = tpu.concatenate %36, %57, %78, %99 in 1 : vector<8x32xf32>, vector<8x32xf32>, vector<8x32xf32>, vector<8x32xf32> -> vector<8x128xf32>
    %101 = vector.extract_strided_slice %11 {offsets = [8, 0], sizes = [8, 128], strides = [1, 1]} : vector<16x384xf32> to vector<8x128xf32>
    %102 = vector.extract_strided_slice %11 {offsets = [8, 128], sizes = [8, 128], strides = [1, 1]} : vector<16x384xf32> to vector<8x128xf32>
    %103 = vector.extract_strided_slice %11 {offsets = [8, 256], sizes = [8, 128], strides = [1, 1]} : vector<16x384xf32> to vector<8x128xf32>
    %104 = vector.extract_strided_slice %101 {offsets = [0, 0], sizes = [8, 32], strides = [1, 1]} : vector<8x128xf32> to vector<8x32xf32>
    %105 = arith.truncf %104 : vector<8x32xf32> to vector<8x32xbf16>
    %106 = vector.extract_strided_slice %102 {offsets = [0, 0], sizes = [8, 32], strides = [1, 1]} : vector<8x128xf32> to vector<8x32xf32>
    %107 = arith.truncf %106 : vector<8x32xf32> to vector<8x32xbf16>
    %108 = vector.extract_strided_slice %103 {offsets = [0, 0], sizes = [8, 32], strides = [1, 1]} : vector<8x128xf32> to vector<8x32xf32>
    %109 = arith.truncf %108 : vector<8x32xf32> to vector<8x32xbf16>
    %cst_26 = arith.constant dense<0.000000e+00> : vector<8x8xf32>
    %110 = tpu.matmul %105, %107, %cst_26 {dimension_numbers = #tpu.dot_dimension_numbers<[1], [1], [0], [0], [0, 0, 1, 0], [], []>} : vector<8x32xbf16>, vector<8x32xbf16>, vector<8x8xf32> -> vector<8x8xf32>
    %111 = vector.broadcast %12 : vector<1x8xf32> to vector<8x8xf32>
    %112 = arith.addf %110, %111 : vector<8x8xf32>
    %cst_27 = arith.constant dense<0xFF800000> : vector<8xf32>
    %113 = vector.multi_reduction <maximumf>, %112, %cst_27 [1] : vector<8x8xf32> to vector<8xf32>
    %114 = vector.shape_cast %113 : vector<8xf32> to vector<8x1xf32>
    %115 = vector.broadcast %114 : vector<8x1xf32> to vector<8x8xf32>
    %116 = arith.subf %112, %115 : vector<8x8xf32>
    %117 = math.exp %116 : vector<8x8xf32>
    %cst_28 = arith.constant dense<0.000000e+00> : vector<8xf32>
    %118 = vector.multi_reduction <add>, %117, %cst_28 [1] : vector<8x8xf32> to vector<8xf32>
    %119 = vector.shape_cast %118 : vector<8xf32> to vector<8x1xf32>
    %120 = tpu.reciprocal %119 {approx = true} : vector<8x1xf32> -> vector<8x1xf32>
    %121 = vector.broadcast %120 : vector<8x1xf32> to vector<8x8xf32>
    %122 = arith.mulf %117, %121 : vector<8x8xf32>
    %123 = arith.truncf %122 : vector<8x8xf32> to vector<8x8xbf16>
    %cst_29 = arith.constant dense<0.000000e+00> : vector<8x32xf32>
    %124 = tpu.matmul %123, %109, %cst_29 {dimension_numbers = #tpu.dot_dimension_numbers<[1], [0], [0], [1], [0, 0, 1, 1], [], []>} : vector<8x8xbf16>, vector<8x32xbf16>, vector<8x32xf32> -> vector<8x32xf32>
    %125 = vector.extract_strided_slice %101 {offsets = [0, 32], sizes = [8, 32], strides = [1, 1]} : vector<8x128xf32> to vector<8x32xf32>
    %126 = arith.truncf %125 : vector<8x32xf32> to vector<8x32xbf16>
    %127 = vector.extract_strided_slice %102 {offsets = [0, 32], sizes = [8, 32], strides = [1, 1]} : vector<8x128xf32> to vector<8x32xf32>
    %128 = arith.truncf %127 : vector<8x32xf32> to vector<8x32xbf16>
    %129 = vector.extract_strided_slice %103 {offsets = [0, 32], sizes = [8, 32], strides = [1, 1]} : vector<8x128xf32> to vector<8x32xf32>
    %130 = arith.truncf %129 : vector<8x32xf32> to vector<8x32xbf16>
    %cst_30 = arith.constant dense<0.000000e+00> : vector<8x8xf32>
    %131 = tpu.matmul %126, %128, %cst_30 {dimension_numbers = #tpu.dot_dimension_numbers<[1], [1], [0], [0], [0, 0, 1, 0], [], []>} : vector<8x32xbf16>, vector<8x32xbf16>, vector<8x8xf32> -> vector<8x8xf32>
    %132 = vector.broadcast %12 : vector<1x8xf32> to vector<8x8xf32>
    %133 = arith.addf %131, %132 : vector<8x8xf32>
    %cst_31 = arith.constant dense<0xFF800000> : vector<8xf32>
    %134 = vector.multi_reduction <maximumf>, %133, %cst_31 [1] : vector<8x8xf32> to vector<8xf32>
    %135 = vector.shape_cast %134 : vector<8xf32> to vector<8x1xf32>
    %136 = vector.broadcast %135 : vector<8x1xf32> to vector<8x8xf32>
    %137 = arith.subf %133, %136 : vector<8x8xf32>
    %138 = math.exp %137 : vector<8x8xf32>
    %cst_32 = arith.constant dense<0.000000e+00> : vector<8xf32>
    %139 = vector.multi_reduction <add>, %138, %cst_32 [1] : vector<8x8xf32> to vector<8xf32>
    %140 = vector.shape_cast %139 : vector<8xf32> to vector<8x1xf32>
    %141 = tpu.reciprocal %140 {approx = true} : vector<8x1xf32> -> vector<8x1xf32>
    %142 = vector.broadcast %141 : vector<8x1xf32> to vector<8x8xf32>
    %143 = arith.mulf %138, %142 : vector<8x8xf32>
    %144 = arith.truncf %143 : vector<8x8xf32> to vector<8x8xbf16>
    %cst_33 = arith.constant dense<0.000000e+00> : vector<8x32xf32>
    %145 = tpu.matmul %144, %130, %cst_33 {dimension_numbers = #tpu.dot_dimension_numbers<[1], [0], [0], [1], [0, 0, 1, 1], [], []>} : vector<8x8xbf16>, vector<8x32xbf16>, vector<8x32xf32> -> vector<8x32xf32>
    %146 = vector.extract_strided_slice %101 {offsets = [0, 64], sizes = [8, 32], strides = [1, 1]} : vector<8x128xf32> to vector<8x32xf32>
    %147 = arith.truncf %146 : vector<8x32xf32> to vector<8x32xbf16>
    %148 = vector.extract_strided_slice %102 {offsets = [0, 64], sizes = [8, 32], strides = [1, 1]} : vector<8x128xf32> to vector<8x32xf32>
    %149 = arith.truncf %148 : vector<8x32xf32> to vector<8x32xbf16>
    %150 = vector.extract_strided_slice %103 {offsets = [0, 64], sizes = [8, 32], strides = [1, 1]} : vector<8x128xf32> to vector<8x32xf32>
    %151 = arith.truncf %150 : vector<8x32xf32> to vector<8x32xbf16>
    %cst_34 = arith.constant dense<0.000000e+00> : vector<8x8xf32>
    %152 = tpu.matmul %147, %149, %cst_34 {dimension_numbers = #tpu.dot_dimension_numbers<[1], [1], [0], [0], [0, 0, 1, 0], [], []>} : vector<8x32xbf16>, vector<8x32xbf16>, vector<8x8xf32> -> vector<8x8xf32>
    %153 = vector.broadcast %12 : vector<1x8xf32> to vector<8x8xf32>
    %154 = arith.addf %152, %153 : vector<8x8xf32>
    %cst_35 = arith.constant dense<0xFF800000> : vector<8xf32>
    %155 = vector.multi_reduction <maximumf>, %154, %cst_35 [1] : vector<8x8xf32> to vector<8xf32>
    %156 = vector.shape_cast %155 : vector<8xf32> to vector<8x1xf32>
    %157 = vector.broadcast %156 : vector<8x1xf32> to vector<8x8xf32>
    %158 = arith.subf %154, %157 : vector<8x8xf32>
    %159 = math.exp %158 : vector<8x8xf32>
    %cst_36 = arith.constant dense<0.000000e+00> : vector<8xf32>
    %160 = vector.multi_reduction <add>, %159, %cst_36 [1] : vector<8x8xf32> to vector<8xf32>
    %161 = vector.shape_cast %160 : vector<8xf32> to vector<8x1xf32>
    %162 = tpu.reciprocal %161 {approx = true} : vector<8x1xf32> -> vector<8x1xf32>
    %163 = vector.broadcast %162 : vector<8x1xf32> to vector<8x8xf32>
    %164 = arith.mulf %159, %163 : vector<8x8xf32>
    %165 = arith.truncf %164 : vector<8x8xf32> to vector<8x8xbf16>
    %cst_37 = arith.constant dense<0.000000e+00> : vector<8x32xf32>
    %166 = tpu.matmul %165, %151, %cst_37 {dimension_numbers = #tpu.dot_dimension_numbers<[1], [0], [0], [1], [0, 0, 1, 1], [], []>} : vector<8x8xbf16>, vector<8x32xbf16>, vector<8x32xf32> -> vector<8x32xf32>
    %167 = vector.extract_strided_slice %101 {offsets = [0, 96], sizes = [8, 32], strides = [1, 1]} : vector<8x128xf32> to vector<8x32xf32>
    %168 = arith.truncf %167 : vector<8x32xf32> to vector<8x32xbf16>
    %169 = vector.extract_strided_slice %102 {offsets = [0, 96], sizes = [8, 32], strides = [1, 1]} : vector<8x128xf32> to vector<8x32xf32>
    %170 = arith.truncf %169 : vector<8x32xf32> to vector<8x32xbf16>
    %171 = vector.extract_strided_slice %103 {offsets = [0, 96], sizes = [8, 32], strides = [1, 1]} : vector<8x128xf32> to vector<8x32xf32>
    %172 = arith.truncf %171 : vector<8x32xf32> to vector<8x32xbf16>
    %cst_38 = arith.constant dense<0.000000e+00> : vector<8x8xf32>
    %173 = tpu.matmul %168, %170, %cst_38 {dimension_numbers = #tpu.dot_dimension_numbers<[1], [1], [0], [0], [0, 0, 1, 0], [], []>} : vector<8x32xbf16>, vector<8x32xbf16>, vector<8x8xf32> -> vector<8x8xf32>
    %174 = vector.broadcast %12 : vector<1x8xf32> to vector<8x8xf32>
    %175 = arith.addf %173, %174 : vector<8x8xf32>
    %cst_39 = arith.constant dense<0xFF800000> : vector<8xf32>
    %176 = vector.multi_reduction <maximumf>, %175, %cst_39 [1] : vector<8x8xf32> to vector<8xf32>
    %177 = vector.shape_cast %176 : vector<8xf32> to vector<8x1xf32>
    %178 = vector.broadcast %177 : vector<8x1xf32> to vector<8x8xf32>
    %179 = arith.subf %175, %178 : vector<8x8xf32>
    %180 = math.exp %179 : vector<8x8xf32>
    %cst_40 = arith.constant dense<0.000000e+00> : vector<8xf32>
    %181 = vector.multi_reduction <add>, %180, %cst_40 [1] : vector<8x8xf32> to vector<8xf32>
    %182 = vector.shape_cast %181 : vector<8xf32> to vector<8x1xf32>
    %183 = tpu.reciprocal %182 {approx = true} : vector<8x1xf32> -> vector<8x1xf32>
    %184 = vector.broadcast %183 : vector<8x1xf32> to vector<8x8xf32>
    %185 = arith.mulf %180, %184 : vector<8x8xf32>
    %186 = arith.truncf %185 : vector<8x8xf32> to vector<8x8xbf16>
    %cst_41 = arith.constant dense<0.000000e+00> : vector<8x32xf32>
    %187 = tpu.matmul %186, %172, %cst_41 {dimension_numbers = #tpu.dot_dimension_numbers<[1], [0], [0], [1], [0, 0, 1, 1], [], []>} : vector<8x8xbf16>, vector<8x32xbf16>, vector<8x32xf32> -> vector<8x32xf32>
    %188 = tpu.concatenate %124, %145, %166, %187 in 1 : vector<8x32xf32>, vector<8x32xf32>, vector<8x32xf32>, vector<8x32xf32> -> vector<8x128xf32>
    %189 = tpu.concatenate %100, %188 in 0 : vector<8x128xf32>, vector<8x128xf32> -> vector<16x128xf32>
    %c0_42 = arith.constant 0 : index
    %c0_43 = arith.constant 0 : index
    %c0_44 = arith.constant 0 : index
    %190 = vector.load %arg6[%c0_42, %c0_43, %c0_44] : memref<1x128x128xbf16, #tpu.memory_space<vmem>>, vector<1x128x128xbf16>
    %191 = vector.shape_cast %190 : vector<1x128x128xbf16> to vector<128x128xbf16>
    %192 = arith.truncf %189 : vector<16x128xf32> to vector<16x128xbf16>
    %cst_45 = arith.constant dense<0.000000e+00> : vector<16x128xf32>
    %193 = tpu.matmul %192, %191, %cst_45 {dimension_numbers = #tpu.dot_dimension_numbers<[1], [0], [0], [1], [0, 0, 1, 1], [], []>} : vector<16x128xbf16>, vector<128x128xbf16>, vector<16x128xf32> -> vector<16x128xf32>
    %c0_46 = arith.constant 0 : index
    %c0_47 = arith.constant 0 : index
    %c0_48 = arith.constant 0 : index
    %194 = vector.load %arg7[%c0_46, %c0_47, %c0_48] : memref<1x1x128xf32, #tpu.memory_space<vmem>>, vector<1x1x128xf32>
    %195 = vector.shape_cast %194 : vector<1x1x128xf32> to vector<1x128xf32>
    %196 = vector.broadcast %195 : vector<1x128xf32> to vector<16x128xf32>
    %197 = arith.addf %193, %196 : vector<16x128xf32>
    %198 = arith.addf %197, %3 : vector<16x128xf32>
    %cst_49 = arith.constant dense<0.000000e+00> : vector<16xf32>
    %199 = vector.multi_reduction <add>, %198, %cst_49 [1] : vector<16x128xf32> to vector<16xf32>
    %200 = vector.shape_cast %199 : vector<16xf32> to vector<16x1xf32>
    %cst_50 = arith.constant 1.280000e+02 : f32
    %201 = vector.broadcast %cst_50 : f32 to vector<16x1xf32>
    %202 = arith.divf %200, %201 : vector<16x1xf32>
    %203 = vector.broadcast %202 : vector<16x1xf32> to vector<16x128xf32>
    %204 = arith.subf %198, %203 : vector<16x128xf32>
    %205 = arith.mulf %204, %204 : vector<16x128xf32>
    %cst_51 = arith.constant dense<0.000000e+00> : vector<16xf32>
    %206 = vector.multi_reduction <add>, %205, %cst_51 [1] : vector<16x128xf32> to vector<16xf32>
    %207 = vector.shape_cast %206 : vector<16xf32> to vector<16x1xf32>
    %cst_52 = arith.constant 1.280000e+02 : f32
    %208 = vector.broadcast %cst_52 : f32 to vector<16x1xf32>
    %209 = arith.divf %207, %208 : vector<16x1xf32>
    %cst_53 = arith.constant 9.99999974E-6 : f32
    %210 = vector.broadcast %cst_53 : f32 to vector<16x1xf32>
    %211 = arith.addf %209, %210 : vector<16x1xf32>
    %212 = math.rsqrt %211 : vector<16x1xf32>
    %213 = vector.broadcast %212 : vector<16x1xf32> to vector<16x128xf32>
    %214 = arith.mulf %204, %213 : vector<16x128xf32>
    %c0_54 = arith.constant 0 : index
    %c0_55 = arith.constant 0 : index
    %c0_56 = arith.constant 0 : index
    %215 = vector.load %arg8[%c0_54, %c0_55, %c0_56] : memref<1x1x128xf32, #tpu.memory_space<vmem>>, vector<1x1x128xf32>
    %216 = vector.shape_cast %215 : vector<1x1x128xf32> to vector<1x128xf32>
    %217 = vector.broadcast %216 : vector<1x128xf32> to vector<16x128xf32>
    %218 = arith.mulf %214, %217 : vector<16x128xf32>
    %c0_57 = arith.constant 0 : index
    %c0_58 = arith.constant 0 : index
    %c0_59 = arith.constant 0 : index
    %219 = vector.load %arg9[%c0_57, %c0_58, %c0_59] : memref<1x1x128xf32, #tpu.memory_space<vmem>>, vector<1x1x128xf32>
    %220 = vector.shape_cast %219 : vector<1x1x128xf32> to vector<1x128xf32>
    %221 = vector.broadcast %220 : vector<1x128xf32> to vector<16x128xf32>
    %222 = arith.addf %218, %221 : vector<16x128xf32>
    %c0_60 = arith.constant 0 : index
    %c0_61 = arith.constant 0 : index
    %c0_62 = arith.constant 0 : index
    %223 = vector.load %arg10[%c0_60, %c0_61, %c0_62] : memref<1x128x256xbf16, #tpu.memory_space<vmem>>, vector<1x128x256xbf16>
    %224 = vector.shape_cast %223 : vector<1x128x256xbf16> to vector<128x256xbf16>
    %225 = arith.truncf %222 : vector<16x128xf32> to vector<16x128xbf16>
    %cst_63 = arith.constant dense<0.000000e+00> : vector<16x256xf32>
    %226 = tpu.matmul %225, %224, %cst_63 {dimension_numbers = #tpu.dot_dimension_numbers<[1], [0], [0], [1], [0, 0, 1, 1], [], []>} : vector<16x128xbf16>, vector<128x256xbf16>, vector<16x256xf32> -> vector<16x256xf32>
    %c0_64 = arith.constant 0 : index
    %c0_65 = arith.constant 0 : index
    %c0_66 = arith.constant 0 : index
    %227 = vector.load %arg11[%c0_64, %c0_65, %c0_66] : memref<1x1x256xf32, #tpu.memory_space<vmem>>, vector<1x1x256xf32>
    %228 = vector.shape_cast %227 : vector<1x1x256xf32> to vector<1x256xf32>
    %229 = vector.broadcast %228 : vector<1x256xf32> to vector<16x256xf32>
    %230 = arith.addf %226, %229 : vector<16x256xf32>
    %cst_67 = arith.constant 0.000000e+00 : f32
    %231 = vector.broadcast %cst_67 : f32 to vector<16x256xf32>
    %232 = arith.maximumf %230, %231 : vector<16x256xf32>
    %c0_68 = arith.constant 0 : index
    %c0_69 = arith.constant 0 : index
    %c0_70 = arith.constant 0 : index
    %233 = vector.load %arg12[%c0_68, %c0_69, %c0_70] : memref<1x256x128xbf16, #tpu.memory_space<vmem>>, vector<1x256x128xbf16>
    %234 = vector.shape_cast %233 : vector<1x256x128xbf16> to vector<256x128xbf16>
    %235 = arith.truncf %232 : vector<16x256xf32> to vector<16x256xbf16>
    %cst_71 = arith.constant dense<0.000000e+00> : vector<16x128xf32>
    %236 = tpu.matmul %235, %234, %cst_71 {dimension_numbers = #tpu.dot_dimension_numbers<[1], [0], [0], [1], [0, 0, 1, 1], [], []>} : vector<16x256xbf16>, vector<256x128xbf16>, vector<16x128xf32> -> vector<16x128xf32>
    %c0_72 = arith.constant 0 : index
    %c0_73 = arith.constant 0 : index
    %c0_74 = arith.constant 0 : index
    %237 = vector.load %arg13[%c0_72, %c0_73, %c0_74] : memref<1x1x128xf32, #tpu.memory_space<vmem>>, vector<1x1x128xf32>
    %238 = vector.shape_cast %237 : vector<1x1x128xf32> to vector<1x128xf32>
    %239 = vector.broadcast %238 : vector<1x128xf32> to vector<16x128xf32>
    %240 = arith.addf %236, %239 : vector<16x128xf32>
    %241 = arith.addf %240, %222 : vector<16x128xf32>
    %cst_75 = arith.constant dense<0.000000e+00> : vector<16xf32>
    %242 = vector.multi_reduction <add>, %241, %cst_75 [1] : vector<16x128xf32> to vector<16xf32>
    %243 = vector.shape_cast %242 : vector<16xf32> to vector<16x1xf32>
    %cst_76 = arith.constant 1.280000e+02 : f32
    %244 = vector.broadcast %cst_76 : f32 to vector<16x1xf32>
    %245 = arith.divf %243, %244 : vector<16x1xf32>
    %246 = vector.broadcast %245 : vector<16x1xf32> to vector<16x128xf32>
    %247 = arith.subf %241, %246 : vector<16x128xf32>
    %248 = arith.mulf %247, %247 : vector<16x128xf32>
    %cst_77 = arith.constant dense<0.000000e+00> : vector<16xf32>
    %249 = vector.multi_reduction <add>, %248, %cst_77 [1] : vector<16x128xf32> to vector<16xf32>
    %250 = vector.shape_cast %249 : vector<16xf32> to vector<16x1xf32>
    %cst_78 = arith.constant 1.280000e+02 : f32
    %251 = vector.broadcast %cst_78 : f32 to vector<16x1xf32>
    %252 = arith.divf %250, %251 : vector<16x1xf32>
    %cst_79 = arith.constant 9.99999974E-6 : f32
    %253 = vector.broadcast %cst_79 : f32 to vector<16x1xf32>
    %254 = arith.addf %252, %253 : vector<16x1xf32>
    %255 = math.rsqrt %254 : vector<16x1xf32>
    %256 = vector.broadcast %255 : vector<16x1xf32> to vector<16x128xf32>
    %257 = arith.mulf %247, %256 : vector<16x128xf32>
    %c0_80 = arith.constant 0 : index
    %c0_81 = arith.constant 0 : index
    %c0_82 = arith.constant 0 : index
    %258 = vector.load %arg14[%c0_80, %c0_81, %c0_82] : memref<1x1x128xf32, #tpu.memory_space<vmem>>, vector<1x1x128xf32>
    %259 = vector.shape_cast %258 : vector<1x1x128xf32> to vector<1x128xf32>
    %260 = vector.broadcast %259 : vector<1x128xf32> to vector<16x128xf32>
    %261 = arith.mulf %257, %260 : vector<16x128xf32>
    %c0_83 = arith.constant 0 : index
    %c0_84 = arith.constant 0 : index
    %c0_85 = arith.constant 0 : index
    %262 = vector.load %arg15[%c0_83, %c0_84, %c0_85] : memref<1x1x128xf32, #tpu.memory_space<vmem>>, vector<1x1x128xf32>
    %263 = vector.shape_cast %262 : vector<1x1x128xf32> to vector<1x128xf32>
    %264 = vector.broadcast %263 : vector<1x128xf32> to vector<16x128xf32>
    %265 = arith.addf %261, %264 : vector<16x128xf32>
    %c0_86 = arith.constant 0 : index
    %c0_87 = arith.constant 0 : index
    %266 = vector.load %arg16[%c0_86, %c0_87] : memref<16x128xf32, #tpu.memory_space<vmem>>, vector<16x128xf32>
    tpu.vector_store %arg16[%c0_86, %c0_87], %265 {strides = array<i32>} : memref<16x128xf32, #tpu.memory_space<vmem>>, vector<16x128xf32>,
    return
  }
  func.func @transform_0(%arg0: i32, %arg1: i32) -> (i32, i32) {
    %c0_i32 = arith.constant 0 : i32
    %c0_i32_0 = arith.constant 0 : i32
    %c0_i32_1 = arith.constant 0 : i32
    return %c0_i32, %c0_i32_0 : i32, i32
  }
  func.func @transform_1(%arg0: i32, %arg1: i32) -> (i32, i32) {
    %c0_i32 = arith.constant 0 : i32
    %c0_i32_0 = arith.constant 0 : i32
    return %arg0, %c0_i32 : i32, i32
  }
  func.func @transform_2(%arg0: i32, %arg1: i32) -> (i32, i32, i32) {
    %c0_i32 = arith.constant 0 : i32
    %c0_i32_0 = arith.constant 0 : i32
    %c0_i32_1 = arith.constant 0 : i32
    return %arg1, %c0_i32, %c0_i32_0 : i32, i32, i32
  }
  func.func @transform_3(%arg0: i32, %arg1: i32) -> (i32, i32, i32) {
    %c0_i32 = arith.constant 0 : i32
    %c0_i32_0 = arith.constant 0 : i32
    %c0_i32_1 = arith.constant 0 : i32
    return %arg1, %c0_i32, %c0_i32_0 : i32, i32, i32
  }
  func.func @transform_4(%arg0: i32, %arg1: i32) -> (i32, i32, i32) {
    %c0_i32 = arith.constant 0 : i32
    %c0_i32_0 = arith.constant 0 : i32
    %c0_i32_1 = arith.constant 0 : i32
    return %arg1, %c0_i32, %c0_i32_0 : i32, i32, i32
  }
  func.func @transform_5(%arg0: i32, %arg1: i32) -> (i32, i32, i32) {
    %c0_i32 = arith.constant 0 : i32
    %c0_i32_0 = arith.constant 0 : i32
    %c0_i32_1 = arith.constant 0 : i32
    return %arg1, %c0_i32, %c0_i32_0 : i32, i32, i32
  }
  func.func @transform_6(%arg0: i32, %arg1: i32) -> (i32, i32, i32) {
    %c0_i32 = arith.constant 0 : i32
    %c0_i32_0 = arith.constant 0 : i32
    %c0_i32_1 = arith.constant 0 : i32
    return %arg1, %c0_i32, %c0_i32_0 : i32, i32, i32
  }
  func.func @transform_7(%arg0: i32, %arg1: i32) -> (i32, i32, i32) {
    %c0_i32 = arith.constant 0 : i32
    %c0_i32_0 = arith.constant 0 : i32
    %c0_i32_1 = arith.constant 0 : i32
    return %arg1, %c0_i32, %c0_i32_0 : i32, i32, i32
  }
  func.func @transform_8(%arg0: i32, %arg1: i32) -> (i32, i32, i32) {
    %c0_i32 = arith.constant 0 : i32
    %c0_i32_0 = arith.constant 0 : i32
    %c0_i32_1 = arith.constant 0 : i32
    return %arg1, %c0_i32, %c0_i32_0 : i32, i32, i32
  }
  func.func @transform_9(%arg0: i32, %arg1: i32) -> (i32, i32, i32) {
    %c0_i32 = arith.constant 0 : i32
    %c0_i32_0 = arith.constant 0 : i32
    %c0_i32_1 = arith.constant 0 : i32
    return %arg1, %c0_i32, %c0_i32_0 : i32, i32, i32
  }
  func.func @transform_10(%arg0: i32, %arg1: i32) -> (i32, i32, i32) {
    %c0_i32 = arith.constant 0 : i32
    %c0_i32_0 = arith.constant 0 : i32
    %c0_i32_1 = arith.constant 0 : i32
    return %arg1, %c0_i32, %c0_i32_0 : i32, i32, i32
  }
  func.func @transform_11(%arg0: i32, %arg1: i32) -> (i32, i32, i32) {
    %c0_i32 = arith.constant 0 : i32
    %c0_i32_0 = arith.constant 0 : i32
    %c0_i32_1 = arith.constant 0 : i32
    return %arg1, %c0_i32, %c0_i32_0 : i32, i32, i32
  }
  func.func @transform_12(%arg0: i32, %arg1: i32) -> (i32, i32, i32) {
    %c0_i32 = arith.constant 0 : i32
    %c0_i32_0 = arith.constant 0 : i32
    %c0_i32_1 = arith.constant 0 : i32
    return %arg1, %c0_i32, %c0_i32_0 : i32, i32, i32
  }
  func.func @transform_13(%arg0: i32, %arg1: i32) -> (i32, i32, i32) {
    %c0_i32 = arith.constant 0 : i32
    %c0_i32_0 = arith.constant 0 : i32
    %c0_i32_1 = arith.constant 0 : i32
    return %arg1, %c0_i32, %c0_i32_0 : i32, i32, i32
  }
  func.func @transform_14(%arg0: i32, %arg1: i32) -> (i32, i32) {
    %c0_i32 = arith.constant 0 : i32
    %c0_i32_0 = arith.constant 0 : i32
    return %arg0, %c0_i32 : i32, i32
  }
}

</mosaic_0001>

<bundles_post_ra>
// kernel: tpu_custom_call.1
= control target key start
LH: loop header
LB: loop body
LE: loop exit
PB: predicated region body
PF: predicated region fallthrough
CT: control target
= control target key end

     0   :  { %s4348_s0 = inlined_call_operand.hbm [shape: f32[1,8], index: 0, kind: input, shape index: {}]   ;;  %s4349_s1 = inlined_call_operand.hbm [shape: f32[16,128], index: 1, kind: input, shape index: {}]   ;;  %s4350_s2 = inlined_call_operand.hbm [shape: bf16[2,128,384], index: 2, kind: input, shape index: {}]   ;;  %s4351_s3 = inlined_call_operand.vmem [shape: f32[2,1,384], index: 3, kind: input, shape index: {}]   ;;  %s4352_s4 = inlined_call_operand.hbm [shape: bf16[2,128,128], index: 4, kind: input, shape index: {}]   ;;  %s4353_s5 = inlined_call_operand.vmem [shape: f32[2,1,128], index: 5, kind: input, shape index: {}]   ;;  %s4354_s6 = inlined_call_operand.vmem [shape: f32[2,1,128], index: 6, kind: input, shape index: {}]   ;;  %s4355_s7 = inlined_call_operand.vmem [shape: f32[2,1,128], index: 7, kind: input, shape index: {}]   ;;  %s4356_s8 = inlined_call_operand.hbm [shape: bf16[2,128,256], index: 8, kind: input, shape index: {}]   ;;  %s4357_s9 = inlined_call_operand.vmem [shape: f32[2,1,256], index: 9, kind: input, shape index: {}]   ;;  %s4358_s10 = inlined_call_operand.hbm [shape: bf16[2,256,128], index: 10, kind: input, shape index: {}]   ;;  %s4359_s11 = inlined_call_operand.vmem [shape: f32[2,1,128], index: 11, kind: input, shape index: {}]   ;;  %s4360_s12 = inlined_call_operand.vmem [shape: f32[2,1,128], index: 12, kind: input, shape index: {}]   ;;  %s4361_s13 = inlined_call_operand.vmem [shape: f32[2,1,128], index: 13, kind: input, shape index: {}]   ;;  %s4362_s14 = inlined_call_operand.hbm [shape: f32[16,128], index: 14, kind: output, shape index: {}]  }
   0x1   :  { %4379 = sst [smem:[#allocation19_spill]] %s4348_s0 }
   0x2   :  { %4380 = sst [smem:[#allocation20_spill]] %s4349_s1 }
   0x3   :  { %4381 = sst [smem:[#allocation21_spill]] %s4350_s2 }
   0x4   :  { %4382 = sst [smem:[#allocation22_spill]] %s4351_s3 }
   0x5   :  { %4383 = sst [smem:[#allocation23_spill]] %s4352_s4 }
   0x6   :  { %4384 = sst [smem:[#allocation24_spill]] %s4354_s6 }
   0x7   :  { %4385 = sst [smem:[#allocation25_spill]] %s4355_s7 }
   0x8   :  { %4386 = sst [smem:[#allocation26_spill]] %s4356_s8 }
   0x9   :  { %4387 = sst [smem:[#allocation27_spill]] %s4357_s9 }
   0xa   :  { %4388 = sst [smem:[#allocation28_spill]] %s4358_s10 }
   0xb   :  { %4389 = sst [smem:[#allocation29_spill]] %s4359_s11 }
   0xc   :  { %4390 = sst [smem:[#allocation30_spill]] %s4360_s12 }
   0xd   :  { %4391 = sst [smem:[#allocation31_spill]] %s4361_s13 }
   0xe   :  { %4392 = sst [smem:[#allocation32_spill]] %s4362_s14 }
   0xf   :  { %19 = vsyncpa [#allocation3], 0 }
  0x10   :  { %20 = vsyncpa [#allocation6], 0 }
  0x11   :  { %21 = vsyncpa [#allocation4], 0  ;;  %s3654_s29 = smov 0   ;;  %s3656_s30 = smov 0  }
  0x12   :  { %s3658_s15 = smov 0   ;;  %s3660_s16 = smov 0  }
  0x13   :  { %s3662_s17 = smov 0   ;;  %s3664_s18 = smov 0  }
  0x14 LB: > { %4393 = sst [smem:[#allocation16_spill]] %s3552_s17  ;;  %s3683_s19 = sadd.s32 4294967295, %s3556_s18   ;;  %s3556_s18 = sphi %s3664_s18, %s27_s18   ;;  %s3552_s17 = sphi %s3662_s17, %s4444_s17   ;;  %s3548_s16 = sphi %s3660_s16, %s4443_s16   ;;  %s3544_s15 = sphi %s3658_s15, %s4447_s15   ;;  %s3540_s30 = sphi %s3656_s30, %s4446_s30   ;;  %s3536_s29 = sphi %s3654_s29, %s4445_s29  }
  0x15   : > { %p100_p0 = scmp.ne.s32.totalorder %s3544_s15, %s3540_s30  ;;  %p101_p1 = scmp.eq.s32.totalorder %s3556_s18, 0 }
  0x16   : > { %p106_p2 = scmp.ne.s32.totalorder %s3540_s30, %s3536_s29  ;;  %p4364_p3 = scmp.eq.s32.totalorder %s3683_s19, 0 }
  0x17   : > { %p102_p4 = por %p101_p1, %p100_p0  ;;  %p2717_p5 = scmp.ge.s32.totalorder %s3556_s18, 1 }
  0x18   : > { %p3694_p6 = por %p4364_p3, %p106_p2  ;;  %p429_p7 = scmp.lt.s32.totalorder %s3556_s18, 3 }
  0x19   : > { %s3558_s23 = smov [#allocation2]   ;;  %p3087_p10 = scmp.lt.s32.totalorder %s3556_s18, 2 }
  0x1a   : > { %s4394_s21 = scalar_select %p3694_p6, 1, 0 }
  0x1b   : > { %p3699_p8 = pnand %p2717_p5, %p429_p7  ;;  %s442_s24 = sshll.u32 %s3558_s23, 4  ;;  %s443_s24 = int_to_ptr.vmem [resolvable:$true] %s442_s24 }
  0x1c   : > { %p3713_p12 = pnand %p3087_p10, %p102_p4  ;;  %s4398_s0 = sld [smem:[#allocation19_spill]] }
  0x1d   : > { %s4395_s22 = scalar_select %p3699_p8, 1, 0 }
  0x1e   : > { %p3065_p9 = pneg %p3699_p8 }
  0x1f   : > { %s4397_s27 = scalar_select %p3713_p12, 1, 0 }
  0x20   : > { %p3709_p11 = pnand %p3065_p9, %p4364_p3 }
  0x22   : > { %s4396_s26 = scalar_select %p3709_p11, 1, 0 }
  0x23   : > { %s3292_s23 = scalar_lea.hbm %s4398_s0, 16  ;;  %p4368_p0 = pneg %p3709_p11 }
  0x24   : > { %p3293_p13 = scmp.ne.s32.totalorder %s4398_s0, %s3292_s23  ;;  %p3299_p4 = scmp.lt.u32.totalorder %s3292_s23, %s4398_s0 }
  0x26   : > { %p3295_p1 = pnand %p4368_p0, %p3293_p13 }
  0x28   : > { %p3296_p2 = pneg %p3295_p1 }
  0x2a   : > { %p3301_p5 = pnand %p3299_p4, %p3296_p2 }
  0x2c   : > { %3304 = shalt.err (!%p3301_p5)
}
  0x2d   : > { %s3305_s12 = scalar_lea.vmem %s443_s24, 16  ;;  %s3312_s14 = scalar_lea.vmem %s443_s24, 32 }
  0x2e   : > { %p3306_p7 = scmp.ne.s32.totalorder %s443_s24, %s3305_s12  ;;  %p3313_p3 = scmp.lt.s32.totalorder %s443_s24, %s443_s24 }
  0x2f   : > { %p3314_p6 = scmp.lt.s32.totalorder %s3312_s14, %s3305_s12 }
  0x30   : > { %p3308_p9 = pnand %p3306_p7, %p4368_p0 }
  0x31   : > { %p3315_p8 = por %p3314_p6, %p3313_p3 }
  0x32   : > { %p3309_p10 = pneg %p3308_p9 }
  0x34   : > { %p3316_p12 = pnand %p3315_p8, %p3309_p10 }
  0x36   : > { %3319 = shalt.err (!%p3316_p12)
}
  0x37   : > { %3068 = dma.hbm_to_vmem [thread:$0]  (!%p3709_p11), %s4398_s0, 16, %s443_s24, [#allocation3]  }
  0x38   : > { %s36_s25 = sadd.s32 1, %s3552_s17  ;;  %s3741_s28 = sand.u32 1, %s3544_s15  }
  0x39   : > { %p37_p3 = scmp.ge.s32.totalorder %s36_s25, 2  ;;  %s3041_s12 = smul.u32 192, %s3741_s28 }
  0x3a   : > { %s3042_s29 = smul.u32 3072, %s3552_s17  ;;  %s4400_s2 = sld [smem:[#allocation21_spill]] }
  0x3b   : > { %s4449_s25 = smov (%p37_p3, %s36_s25), 0  ;;  %s473_s13 = scalar_lea.vmem [#allocation7], %s3041_s12 }
  0x3c   : > { %4399 = sst [smem:[#allocation17_spill]] %s4449_s25  ;;  %s90_s24 = ssub.s32 %s3552_s17, %s4449_s25 }
  0x3d   : > { %s480_s0 = sshll.u32 %s473_s13, 4  ;;  %p91_p6 = scmp.eq.s32.totalorder %s90_s24, 0  ;;  %s3754_s0 = int_to_ptr.vmem [resolvable:$true] %s480_s0 }
  0x3e   : > { %s4401_s9 = sadd.s32 1, %s3544_s15  ;;  %s4403_s7 = sand.u32 1, %s3556_s18  }
  0x3f   : > { %s3760_s3 = scalar_select %p91_p6, %s3544_s15, %s4401_s9  }
  0x40   : > { %s3750_s20 = scalar_lea.hbm %s4400_s2, %s3042_s29  ;;  %s3764_s6 = scalar_lea.sflag [#allocation3], %s4403_s7 }
  0x41   : > { %4402 = sst [smem:[#allocation18_spill]] %s3760_s3  ;;  %s3320_s23 = scalar_lea.hbm %s3750_s20, 3072 }
  0x42   : > { %p3321_p8 = scmp.ne.s32.totalorder %s3750_s20, %s3320_s23  ;;  %p4404_p12 = scmp.ne.s32.totalorder %s4397_s27, 0 }
  0x43   : > { %s3325_s24 = scalar_lea.hbm %s4400_s2, 6144  ;;  %p3326_p4 = scmp.lt.u32.totalorder %s3750_s20, %s4400_s2 }
  0x44   : > { %p3770_p13 = pneg %p4404_p12  ;;  %p3327_p5 = scmp.lt.u32.totalorder %s3325_s24, %s3320_s23 }
  0x45   : > { %p3329_p9 = scmp.lt.u32.totalorder %s3320_s23, %s3750_s20 }
  0x46   : > { %s4405_s29 = scalar_select %p3770_p13, 1, 0 }
  0x47   : > { %p3323_p1 = pnand %p3770_p13, %p3321_p8  ;;  %p3328_p7 = por %p3327_p5, %p3326_p4 }
  0x49   : > { %p3324_p2 = pneg %p3323_p1  ;;  %p3330_p10 = por %p3329_p9, %p3328_p7 }
  0x4b   : > { %p3331_p3 = pnand %p3330_p10, %p3324_p2 }
  0x4d   : > { %3334 = shalt.err (!%p3331_p3)
}
  0x4e   : > { %s3335_s7 = scalar_lea.vmem %s3754_s0, 3072  ;;  %s3559_s12 = smov [#allocation7]  }
  0x4f   : > { %p3336_p6 = scmp.ne.s32.totalorder %s3754_s0, %s3335_s7  ;;  %s3340_s14 = sshll.u32 %s3559_s12, 4  ;;  %s3341_s14 = int_to_ptr.vmem [resolvable:$false] %s3340_s14 }
  0x50   : > { %s3342_s9 = scalar_lea.vmem %s3341_s14, 6144  ;;  %p3343_p0 = scmp.lt.s32.totalorder %s3754_s0, %s3341_s14 }
  0x51   : > { %p3338_p8 = pnand %p3336_p6, %p3770_p13  ;;  %p3344_p11 = scmp.lt.s32.totalorder %s3342_s9, %s3335_s7 }
  0x53   : > { %p3339_p1 = pneg %p3338_p8  ;;  %p3345_p4 = por %p3344_p11, %p3343_p0 }
  0x55   : > { %p3346_p5 = pnand %p3345_p4, %p3339_p1 }
  0x57   : > { %3349 = shalt.err (!%p3346_p5)
}
  0x58   : > { %s3560_s23 = smov 192   ;;  %s3561_s24 = smov 12  }
  0x59   : > { %3075 = dma.hbm_to_vmem [thread:$0]  (!%p4404_p12), %s3750_s20, 3072, %s3754_s0, %s3764_s6, %s3560_s23, %s3560_s23, %s3561_s24  }
  0x5a   : > { %s2830_s13 = sshll.u32 %s3552_s17, 10  ;;  %s4406_s4 = sld [smem:[#allocation23_spill]] }
  0x5b   : > { %s4407_s7 = sshll.u32 %s3741_s28, 6 }
  0x5c   : > { %s501_s9 = scalar_lea.vmem [#allocation8], %s4407_s7 }
  0x5d   : > { %s508_s2 = sshll.u32 %s501_s9, 4  ;;  %s3802_s2 = int_to_ptr.vmem [resolvable:$true] %s508_s2 }
  0x60   : > { %s3798_s14 = scalar_lea.hbm %s4406_s4, %s2830_s13  ;;  %s3355_s11 = scalar_lea.hbm %s4406_s4, 2048 }
  0x61   : > { %s3350_s25 = scalar_lea.hbm %s3798_s14, 1024  ;;  %p3356_p7 = scmp.lt.u32.totalorder %s3798_s14, %s4406_s4 }
  0x62   : > { %p3351_p11 = scmp.ne.s32.totalorder %s3798_s14, %s3350_s25  ;;  %p3357_p9 = scmp.lt.u32.totalorder %s3355_s11, %s3350_s25 }
  0x63   : > { %p3359_p3 = scmp.lt.u32.totalorder %s3350_s25, %s3798_s14 }
  0x64   : > { %p3353_p0 = pnand %p3351_p11, %p3770_p13  ;;  %p3358_p10 = por %p3357_p9, %p3356_p7 }
  0x66   : > { %p3354_p2 = pneg %p3353_p0  ;;  %p3360_p6 = por %p3359_p3, %p3358_p10 }
  0x68   : > { %p3361_p8 = pnand %p3360_p6, %p3354_p2 }
  0x6a   : > { %3364 = shalt.err (!%p3361_p8)
}
  0x6b   : > { %s3365_s13 = scalar_lea.vmem %s3802_s2, 1024  ;;  %s3562_s12 = smov [#allocation8]  }
  0x6c   : > { %p3366_p1 = scmp.ne.s32.totalorder %s3802_s2, %s3365_s13  ;;  %s3370_s7 = sshll.u32 %s3562_s12, 4  ;;  %s3371_s7 = int_to_ptr.vmem [resolvable:$false] %s3370_s7 }
  0x6d   : > { %s3372_s9 = scalar_lea.vmem %s3371_s7, 2048  ;;  %p3373_p11 = scmp.lt.s32.totalorder %s3802_s2, %s3371_s7 }
  0x6e   : > { %p3368_p4 = pnand %p3366_p1, %p3770_p13  ;;  %p3374_p0 = scmp.lt.s32.totalorder %s3372_s9, %s3365_s13 }
  0x70   : > { %p3369_p5 = pneg %p3368_p4  ;;  %p3375_p7 = por %p3374_p0, %p3373_p11 }
  0x72   : > { %p3376_p9 = pnand %p3375_p7, %p3369_p5 }
  0x74   : > { %3379 = shalt.err (!%p3376_p9)
}
  0x75   : > { %s4372_s25 = smov 64   ;;  %s4373_s0 = smov 4  }
  0x76   : > { %3078 = dma.hbm_to_vmem [thread:$0]  (!%p4404_p12), %s3798_s14, 1024, %s3802_s2, %s3764_s6, %s4372_s25, %s4372_s25, %s4373_s0  }
  0x77   : > { %s4374_s20 = sshll.u32 %s3741_s28, 7  ;;  %s2831_s11 = sshll.u32 %s3552_s17, 11 }
  0x78   : > { %s4408_s8 = sld [smem:[#allocation26_spill]]  ;;  %s540_s12 = scalar_lea.vmem [#allocation9], %s4374_s20 }
  0x79   : > { %s547_s7 = sshll.u32 %s540_s12, 4  ;;  %s3840_s7 = int_to_ptr.vmem [resolvable:$true] %s547_s7 }
  0x7e   : > { %s3836_s13 = scalar_lea.hbm %s4408_s8, %s2831_s11  ;;  %s3385_s23 = scalar_lea.hbm %s4408_s8, 4096 }
  0x7f   : > { %s3380_s9 = scalar_lea.hbm %s3836_s13, 2048  ;;  %p3386_p6 = scmp.lt.u32.totalorder %s3836_s13, %s4408_s8 }
  0x80   : > { %p3381_p2 = scmp.ne.s32.totalorder %s3836_s13, %s3380_s9  ;;  %p3387_p8 = scmp.lt.u32.totalorder %s3385_s23, %s3380_s9 }
  0x81   : > { %p3389_p4 = scmp.lt.u32.totalorder %s3380_s9, %s3836_s13 }
  0x82   : > { %p3383_p10 = pnand %p3381_p2, %p3770_p13  ;;  %p3388_p1 = por %p3387_p8, %p3386_p6 }
  0x84   : > { %p3384_p3 = pneg %p3383_p10  ;;  %p3390_p5 = por %p3389_p4, %p3388_p1 }
  0x86   : > { %p3391_p11 = pnand %p3390_p5, %p3384_p3 }
  0x88   : > { %3394 = shalt.err (!%p3391_p11)
}
  0x89   : > { %s3395_s12 = scalar_lea.vmem %s3840_s7, 2048  ;;  %s3565_s2 = smov [#allocation9]  }
  0x8a   : > { %p3396_p0 = scmp.ne.s32.totalorder %s3840_s7, %s3395_s12  ;;  %s3400_s14 = sshll.u32 %s3565_s2, 4  ;;  %s3401_s14 = int_to_ptr.vmem [resolvable:$false] %s3400_s14 }
  0x8b   : > { %s3402_s25 = scalar_lea.vmem %s3401_s14, 4096  ;;  %p3403_p2 = scmp.lt.s32.totalorder %s3840_s7, %s3401_s14 }
  0x8c   : > { %p3398_p7 = pnand %p3396_p0, %p3770_p13  ;;  %p3404_p10 = scmp.lt.s32.totalorder %s3402_s25, %s3395_s12 }
  0x8e   : > { %p3399_p9 = pneg %p3398_p7  ;;  %p3405_p6 = por %p3404_p10, %p3403_p2 }
  0x90   : > { %p3406_p8 = pnand %p3405_p6, %p3399_p9 }
  0x92   : > { %3409 = shalt.err (!%p3406_p8)
}
  0x93   : > { %s3566_s9 = smov 128   ;;  %s3567_s23 = smov 8  }
  0x94   : > { %3081 = dma.hbm_to_vmem [thread:$0]  (!%p4404_p12), %s3836_s13, 2048, %s3840_s7, %s3764_s6, %s3566_s9, %s3566_s9, %s3567_s23  }
  0x95   : > { %s3568_s24 = smov [#allocation5]   ;;  %s4409_s10 = sld [smem:[#allocation28_spill]] }
  0x96   : > { %s455_s0 = sshll.u32 %s3568_s24, 4  ;;  %s4410_s1 = sld [smem:[#allocation20_spill]]  ;;  %s456_s0 = int_to_ptr.vmem [resolvable:$true] %s455_s0 }
  0x97   : > { %p4411_p1 = scmp.ne.s32.totalorder %s4396_s26, 0 }
  0x99   : > { %p4412_p4 = pneg %p4411_p1 }
  0x9b   : > { %s3869_s12 = scalar_lea.hbm %s4409_s10, %s2831_s11 }
  0x9c   : > { %s3410_s4 = scalar_lea.hbm %s4410_s1, 256 }
  0x9d   : > { %p3411_p3 = scmp.ne.s32.totalorder %s4410_s1, %s3410_s4  ;;  %p3417_p0 = scmp.lt.u32.totalorder %s3410_s4, %s4410_s1 }
  0x9f   : > { %p3413_p5 = pnand %p3411_p3, %p4412_p4 }
  0xa1   : > { %p3414_p11 = pneg %p3413_p5 }
  0xa3   : > { %p3419_p7 = pnand %p3417_p0, %p3414_p11 }
  0xa5   : > { %3422 = shalt.err (!%p3419_p7)
}
  0xa6   : > { %s3423_s11 = scalar_lea.vmem %s456_s0, 256  ;;  %p4413_p2 = pmov %p4412_p4 }
  0xa7   : > { %p3424_p9 = scmp.ne.s32.totalorder %s456_s0, %s3423_s11  ;;  %p3431_p8 = scmp.lt.s32.totalorder %s456_s0, %s456_s0 }
  0xa8   : > { %p3432_p12 = scmp.lt.s32.totalorder %s3423_s11, %s3423_s11 }
  0xa9   : > { %p3426_p10 = pnand %p3424_p9, %p4413_p2 }
  0xaa   : > { %p3433_p13 = por %p3432_p12, %p3431_p8 }
  0xab   : > { %p3427_p6 = pneg %p3426_p10 }
  0xad   : > { %p3434_p3 = pnand %p3433_p13, %p3427_p6 }
  0xaf   : > { %3437 = shalt.err (!%p3434_p3)
}
  0xb0   : > { %3071 = dma.hbm_to_vmem [thread:$0]  (!%p4411_p1), %s4410_s1, 256, %s456_s0, [#allocation6], %s3566_s9, %s3566_s9, %s3567_s23  }
  0xb1   : > { %s4414_s4 = sshll.u32 %s3741_s28, 7  ;;  %s3438_s2 = scalar_lea.hbm %s3869_s12, 2048 }
  0xb2   : > { %s568_s20 = scalar_lea.vmem [#allocation10], %s4414_s4  ;;  %p3439_p12 = scmp.ne.s32.totalorder %s3869_s12, %s3438_s2 }
  0xb3   : > { %s575_s24 = sshll.u32 %s568_s20, 4  ;;  %p4415_p13 = scmp.ne.s32.totalorder %s4405_s29, 0  ;;  %s3893_s24 = int_to_ptr.vmem [resolvable:$true] %s575_s24 }
  0xb4   : > { %s3443_s25 = scalar_lea.hbm %s4409_s10, 4096  ;;  %p3444_p11 = scmp.lt.u32.totalorder %s3869_s12, %s4409_s10 }
  0xb5   : > { %p3441_p4 = pnand %p3439_p12, %p4415_p13  ;;  %p3445_p0 = scmp.lt.u32.totalorder %s3443_s25, %s3438_s2 }
  0xb6   : > { %p3447_p7 = scmp.lt.u32.totalorder %s3438_s2, %s3869_s12 }
  0xb7   : > { %p3442_p5 = pneg %p3441_p4  ;;  %p3446_p1 = por %p3445_p0, %p3444_p11 }
  0xb9   : > { %p3448_p9 = por %p3447_p7, %p3446_p1 }
  0xbb   : > { %p3449_p2 = pnand %p3448_p9, %p3442_p5 }
  0xbd   : > { %3452 = shalt.err (!%p3449_p2)
}
  0xbe   : > { %s3453_s28 = scalar_lea.vmem %s3893_s24, 2048  ;;  %s3569_s0 = smov [#allocation10]  }
  0xbf   : > { %p3454_p10 = scmp.ne.s32.totalorder %s3893_s24, %s3453_s28  ;;  %s3458_s9 = sshll.u32 %s3569_s0, 4  ;;  %s3459_s9 = int_to_ptr.vmem [resolvable:$false] %s3458_s9 }
  0xc0   : > { %s3460_s23 = scalar_lea.vmem %s3459_s9, 4096  ;;  %p3461_p3 = scmp.lt.s32.totalorder %s3893_s24, %s3459_s9 }
  0xc1   : > { %p3456_p6 = pnand %p3454_p10, %p4415_p13  ;;  %p3462_p12 = scmp.lt.s32.totalorder %s3460_s23, %s3453_s28 }
  0xc3   : > { %p3457_p8 = pneg %p3456_p6  ;;  %p3463_p4 = por %p3462_p12, %p3461_p3 }
  0xc5   : > { %p3464_p11 = pnand %p3463_p4, %p3457_p8 }
  0xc7   : > { %3467 = shalt.err (!%p3464_p11)
}
  0xc8   : > { %p4416_p5 = scmp.ne.s32.totalorder %s4397_s27, 0  ;;  %s4417_s11 = smov 4  }
  0xc9   : > { %s4418_s3 = smov 64   ;;  %p4419_p13 = scmp.ne.s32.totalorder %s4395_s22, 0 }
  0xca   : > { %3084 = dma.hbm_to_vmem [thread:$0]  (!%p4416_p5), %s3869_s12, 2048, %s3893_s24, %s3764_s6, %s4418_s3, %s4418_s3, %s4417_s11  }
  0xcb   : > { %605 = sbr.rel (%p4419_p13) target bundleno = 3276 (0xccc), region = 76  ;;  %p4420_p0 = scmp.eq.s32.totalorder (!%p4419_p13), %s3683_s19, 0 }
  0xd2   : > { %3519 = dma.done.wait (%p4420_p0), [#allocation3], 16   ;;  %p4421_p1 = pmov %p4420_p0 }
  0xd3   : > { %p4422_p7 = pmov %p4420_p0 }
  0xd4   : > { %3521 = vsyncadd (%p4421_p1), [#allocation3], 4294967280 }
  0xd5   : > { %3523 = dma.done.wait (%p4422_p7), [#allocation6], 256   ;;  %p4423_p9 = pmov %p4420_p0 }
  0xd6   : > { %s615_s27 = sand.u32 1, %s3683_s19   ;;  %s617_s6 = sand.u32 1, %s3540_s30  }
  0xd7   : > { %3525 = vsyncadd (%p4423_p9), [#allocation6], 4294967040  ;;  %s3043_s29 = smul.u32 192, %s617_s6  ;;  %s616_s22 = scalar_lea.sflag [#allocation3], %s615_s27 }
  0xd8   : > { %p4424_p2 = scmp.ne.s32.totalorder %s4394_s21, 0 }
  0xd9   : > { %s3932_s12 = scalar_lea.vmem [#allocation7], %s3043_s29 }
  0xda   : > { %3527 = dma.done.wait (%p4424_p2), %s616_s22, 8192  }
  0xdb   : > { %3529 = vsyncadd (%p4424_p2), %s616_s22, 4294959104  ;;  %s2734_s8 = sshll.u32 %s617_s6, 6  ;;  %s2735_s4 = sshll.u32 %s617_s6, 7 }
  0xdc   : > { %p728_p10 = scmp.lt.s32.totalorder %s3548_s16, 1  ;;  %s4427_s27 = sld [smem:[#allocation22_spill]] }
  0xdd   : > { %s4428_s10 = sld [smem:[#allocation27_spill]]  ;;  %s4429_s21 = sld [smem:[#allocation29_spill]] }
  0xde   : > { %s3940_s20 = scalar_select %p728_p10, %s3548_s16, 1 }
  0xdf   : > { %s4430_s7 = sld [smem:[#allocation30_spill]]  ;;  %s4431_s23 = sld [smem:[#allocation31_spill]] }
  0xe0   : > { %s3044_s24 = smul.u32 3, %s3940_s20  ;;  %s2737_s29 = sshll.u32 %s3940_s20, 1 }
  0xe1   : > { %s3980_s3 = scalar_lea.vmem [#allocation9], %s2735_s4  ;;  %p2738_p6 = scmp.ne.s32.totalorder %s3548_s16, 0 }
  0xe2   : > { %s3958_s6 = scalar_lea.vmem %s4427_s27, %s3044_s24  ;;  %s3978_s24 = scalar_lea.vmem [#allocation8], %s2734_s8  ;;  %v760_v0 = vld [vmem:[#allocation5] sm:$0xff] (!%p2738_p6)  ;;  %v761_v1 = vld [vmem:[#allocation5 + $0x8] sm:$0xff] (!%p2738_p6) }
  0xe3   : > { %s3964_s17 = scalar_lea.vmem %s4428_s10, %s2737_s29  ;;  %s747_s14 = scalar_lea.vmem %s4429_s21, %s3940_s20  ;;  %762 = vst [vmem:[#allocation11] sm:$0xff] (!%p2738_p6), %v760_v0  ;;  %763 = vst [vmem:[#allocation11 + $0x8] sm:$0xff] (!%p2738_p6), %v761_v1 }
  0xe4   : > { %s3982_s27 = scalar_lea.vmem [#allocation10], %s2735_s4  ;;  %759 = sbr.rel (%p2738_p6) target bundleno = 235 (0xeb), region = 104 }
  0xe5   : > { %s750_s28 = scalar_lea.vmem %s4430_s7, %s3940_s20  ;;  %s753_s11 = scalar_lea.vmem %s4431_s23, %s3940_s20 }
  0xeb PF: > { %v3172_v2 = vld [vmem:[%s3932_s12 + $0x4] ss:$12 sps:$4 sm:$0xff]   ;;  %v3174_v3 = vld [vmem:[%s3932_s12] ss:$12 sps:$4 sm:$0xff]   ;;  %v3570_v4 = vmov 0   ;;  %v3571_v5 = vmov 0.0   ;;  %v801_v31 = vlaneseq  ;;  %s4432_s4 = scalar_lea.vmem %s4353_s5, %s3940_s20 }
  0xec   : > { %976 = vmatprep.mubr.bf16.mxu0 %v3570_v4  ;;  %2905 = vmatprep.subr.bf16.mxu1 %v3571_v5  ;;  %v3175_v6 = vld [vmem:[%s3932_s12 + $0x1c] ss:$12 sps:$4 sm:$0xff]   ;;  %v3177_v7 = vld [vmem:[%s3932_s12 + $0x18] ss:$12 sps:$4 sm:$0xff]   ;;  %v3178_v8 = vld [vmem:[%s3932_s12 + $0x34] ss:$12 sps:$4 sm:$0xff]  }
  0xed   : > { %944 = vmatprep.subr.bf16.mxu0 %v3172_v2  ;;  %v3180_v9 = vld [vmem:[%s3932_s12 + $0x30] ss:$12 sps:$4 sm:$0xff]   ;;  %v3181_v10 = vld [vmem:[%s3932_s12 + $0x4c] ss:$12 sps:$4 sm:$0xff]   ;;  %v3183_v11 = vld [vmem:[%s3932_s12 + $0x48] ss:$12 sps:$4 sm:$0xff]  }
  0xee   : > { %945 = vmatpush1.bf16.msra.mxu0 %v3174_v3  ;;  %v3184_v12 = vld [vmem:[%s3932_s12 + $0x64] ss:$12 sps:$4 sm:$0xff]   ;;  %v3196_v13 = vld [vmem:[%s3932_s12 + $0x8] ss:$12 sps:$4 sm:$0xff]   ;;  %v3197_v14 = vld [vmem:[%s3932_s12 + $0x20] ss:$12 sps:$4 sm:$0xff]  }
  0xef   : > { %946 = vmatprep.subr.bf16.mxu0 %v3175_v6  ;;  %2906 = vmatpush3.bf16.msra.mxu1 %v3196_v13  ;;  %v3186_v15 = vld [vmem:[%s3932_s12 + $0x60] ss:$12 sps:$4 sm:$0xff]   ;;  %v3187_v16 = vld [vmem:[%s3932_s12 + $0x7c] ss:$12 sps:$4 sm:$0xff]   ;;  %v3198_v17 = vld [vmem:[%s3932_s12 + $0x38] ss:$12 sps:$4 sm:$0xff]  }
  0xf0   : > { %2907 = vmatprep.subr.bf16.mxu1 %v3571_v5  ;;  %v3189_v18 = vld [vmem:[%s3932_s12 + $0x78] ss:$12 sps:$4 sm:$0xff]   ;;  %v3190_v19 = vld [vmem:[%s3932_s12 + $0x94] ss:$12 sps:$4 sm:$0xff]   ;;  %v3199_v20 = vld [vmem:[%s3932_s12 + $0x50] ss:$12 sps:$4 sm:$0xff]  }
  0xf1   : > { %v3192_v21 = vld [vmem:[%s3932_s12 + $0x90] ss:$12 sps:$4 sm:$0xff]   ;;  %v3193_v22 = vld [vmem:[%s3932_s12 + $0xac] ss:$12 sps:$4 sm:$0xff]   ;;  %v3200_v23 = vld [vmem:[%s3932_s12 + $0x68] ss:$12 sps:$4 sm:$0xff]  }
  0xf2   : > { %947 = vmatpush1.bf16.msra.mxu0 %v3177_v7  ;;  %v3195_v24 = vld [vmem:[%s3932_s12 + $0xa8] ss:$12 sps:$4 sm:$0xff]   ;;  %v4011_v25 = vld [vmem:[#allocation11] sm:$0xff]  ;;  %v3203_v30 = vld [vmem:[%s3932_s12 + $0xb0] ss:$12 sps:$4 sm:$0xff]   ;;  %vm3572_vm0 = vmmov 0  }
  0xf3   : > { %948 = vmatprep.subr.bf16.mxu0 %v3178_v8  ;;  %2908 = vmatpush3.bf16.msra.mxu1 %v3197_v14  ;;  %v4013_v26 = vld [vmem:[#allocation11 + $0x8] sm:$0xff]  ;;  %v3202_v29 = vld [vmem:[%s3932_s12 + $0x98] ss:$12 sps:$4 sm:$0xff]   ;;  %v4032_v32 = vshrl.u32 %v801_v31, 7  ;;  %vm1038_vm1 = vcmask 261120   ;;  %s3573_s1 = smov 96  }
  0xf4   : > { %2909 = vmatprep.subr.bf16.mxu1 %v3571_v5  ;;  %v3201_v27 = vld [vmem:[%s3932_s12 + $0x80] ss:$12 sps:$4 sm:$0xff]   ;;  %v798_v28 = vpack.c.bf16 %v4013_v26, %v4011_v25  ;;  %2921 = vmatprep.mubr.msk.bf16.mxu1 %vm3572_vm0, %v3571_v5  ;;  %s3574_s10 = smov 64   ;;  %s3575_s16 = smov 32   ;;  %vm1101_vm2 = vcmask 1043456   ;;  %vm1085_vm3 = vcmask 64512  }
  0xf5   : > { %v807_v33 = vsub.s32 1, %v4032_v32  ;;  %v799_v34 = vld [vmem:[%s3958_s6] sm:$0x7]  ;;  %v803_v35 = vsub.s32 0, %v4032_v32  ;;  %v811_v51 = vsub.s32 2, %v4032_v32  ;;  %vm1491_vm4 = vcmask 523264  }
  0xf6   : > { %949 = vmatpush1.bf16.msra.mxu0 %v3180_v9  ;;  %v4071_v61 = vld [vmem:[#allocation2] ss:$0 sm:$0xff]  ;;  %vm1493_vm5 = vcmask 785408   ;;  %s4433_s23 = sld [smem:[#allocation24_spill]]  ;;  %s4435_s2 = sld [smem:[#allocation25_spill]] }
  0xf7   : > { %950 = vmatprep.subr.bf16.mxu0 %v3181_v10  ;;  %2910 = vmatpush3.bf16.msra.mxu1 %v3198_v17  ;;  %v808_v36 = vrot.slane %v799_v34, %v807_v33  ;;  %v804_v37 = vrot.slane %v799_v34, %v803_v35  ;;  %v812_v52 = vrot.slane %v799_v34, %v811_v51  ;;  %v2807_v32 = vld [vmem:[%s747_s14] ss:$0 sm:$0xff]  ;;  %p3090_p8 = scmp.eq.s32.totalorder %s3683_s19, 1 }
  0xf8   : > { %2911 = vmatprep.subr.bf16.mxu1 %v3571_v5 }
  0xfa   : > { %951 = vmatpush1.bf16.msra.mxu0 %v3183_v11 }
  0xfb   : > { %952 = vmatprep.subr.bf16.mxu0 %v3184_v12  ;;  %2912 = vmatpush3.bf16.msra.mxu1 %v3199_v20 }
  0xfc   : > { %2913 = vmatprep.subr.bf16.mxu1 %v3571_v5  ;;  %s4434_s6 = scalar_lea.vmem %s4433_s23, %s3940_s20  ;;  %s4436_s26 = scalar_lea.vmem %s4435_s2, %s3940_s20 }
  0xfe   : > { %953 = vmatpush1.bf16.msra.mxu0 %v3186_v15 }
  0xff   : > { %954 = vmatprep.subr.bf16.mxu0 %v3187_v16  ;;  %2914 = vmatpush3.bf16.msra.mxu1 %v3200_v23 }
 0x100   : > { %2915 = vmatprep.subr.bf16.mxu1 %v3571_v5 }
 0x102   : > { %955 = vmatpush1.bf16.msra.mxu0 %v3189_v18 }
 0x103   : > { %956 = vmatprep.subr.bf16.mxu0 %v3190_v19  ;;  %2916 = vmatpush3.bf16.msra.mxu1 %v3201_v27 }
 0x104   : > { %2917 = vmatprep.subr.bf16.mxu1 %v3571_v5 }
 0x106   : > { %957 = vmatpush1.bf16.msra.mxu0 %v3192_v21 }
 0x107   : > { %958 = vmatprep.subr.bf16.mxu0 %v3193_v22  ;;  %2918 = vmatpush3.bf16.msra.mxu1 %v3202_v29 }
 0x108   : > { %2919 = vmatprep.subr.bf16.mxu1 %v3571_v5 }
 0x10a   : > { %959 = vmatpush1.bf16.msra.mxu0 %v3195_v24 }
 0x10b   : > { %2949 = vmatprep.subr.bf16.mxu0 %v3571_v5  ;;  %2920 = vmatpush3.bf16.msra.mxu1 %v3203_v30 }
 0x10c   : > { %2925 = vmatprep.subr.bf16.mxu1 %v3571_v5 }
 0x10d   : > { %977 = vmatmul.mubr.bf16.vlgmr.msra.gmra.mrb[0].mxu0 %v798_v28 }
 0x10e   : > { %2951 = vmatprep.mubr.msk.bf16.mxu0 %vm3572_vm0, %v3571_v5  ;;  %2922 = vmatmul.mubr.bf16.vlgmr.msra.gmra.mrb[0].mxu1 %v798_v28 }
 0x10f   : > { %2927 = vmatprep.mubr.msk.bf16.mxu1 %vm3572_vm0, %v3571_v5 }
 0x1e0   : > { %v978_v38 = vpop.f32.mrb[0].mxu0 }
 0x1e1   : > { %v980_v39 = vpop.f32.mrb[1].mxu0  ;;  %v979_v43 = vadd.f32 %v978_v38, %v804_v37  ;;  %v1021_v53 = vpop.f32.mrb[0].mxu1 }
 0x1e2   : > { %v981_v40 = vadd.f32 %v980_v39, %v808_v36  ;;  %v982_v41 = vpop.f32.mrb[2].mxu0  ;;  %v1022_v54 = vadd.f32 %v1021_v53, %v812_v52  ;;  %v2923_v55 = vpop.f32.mrb[1].mxu1 }
 0x1e3   : > { %v984_v42 = vpop.f32.mrb[3].mxu0  ;;  %v1029_v46 = vpack.c.bf16 %v979_v43, %v979_v43  ;;  %v983_v48 = vadd.f32 %v982_v41, %v804_v37  ;;  %v1024_v56 = vpop.f32.mrb[2].mxu1 }
 0x1e4   : > { %v1030_v44 = vpack.c.bf16 %v981_v40, %v981_v40  ;;  %v985_v47 = vadd.f32 %v984_v42, %v808_v36  ;;  %v4064_v57 = vpack.c.bf16 %v1022_v54, %v1022_v54  ;;  %v4066_v58 = vadd.f32 %v1024_v56, %v812_v52  ;;  %v2924_v59 = vpop.f32.mrb[3].mxu1 }
 0x1e5   : > { %v4055_v50 = vpack.c.bf16 %v983_v48, %v983_v48 }
 0x1e6   : > { %1149 = vrot.lane.b32.xlu1 %v1030_v44, %s3573_s1  ;;  %v1043_v45 = vsel %vm1038_vm1, %v1030_v44, 0  ;;  %v4051_v49 = vpack.c.bf16 %v985_v47, %v985_v47  ;;  %v1103_v60 = vsel %vm1101_vm2, %v4064_v57, 0 }
 0x1e7   : > { %2926 = vmatpush3.bf16.xpose.msra.mxu1 %v1043_v45 }
 0x1e8   : > { %2931 = vmatprep.subr.bf16.mxu1 %v3571_v5  ;;  %v1502_v24 = vsel %vm1038_vm1, %v4051_v49, 0 }
 0x1ea   : > { %1146 = vrot.lane.b32.xlu1 %v1029_v46, %s3573_s1 }
 0x1ee   : > { %1258 = vrot.lane.b32.xlu1 %v1029_v46, %s3574_s10  ;;  %2928 = vmatmul.mubr.msk.bf16.vlgmr.msra.gmra.mrb[4].mxu1 %vm1038_vm1, %v1029_v46 }
 0x1ef   : > { %2933 = vmatprep.mubr.msk.bf16.mxu1 %vm3572_vm0, %v3571_v5  ;;  %2932 = vmatpush3.bf16.msra.mxu1 %v1103_v60 }
 0x1f0   : > { %2937 = vmatprep.subr.bf16.mxu1 %v3571_v5 }
 0x1f2   : > { %1370 = vrot.lane.b32.xlu1 %v1030_v44, %s3575_s16 }
 0x1f6   : > { %1368 = vrot.lane.b32.xlu1 %v1029_v46, %s3575_s16 }
 0x1fa   : > { %1606 = vrot.lane.b32.xlu1 %v4051_v49, %s3573_s1 }
 0x1fe   : > { %1603 = vrot.lane.b32.xlu1 %v4055_v50, %s3573_s1 }
 0x202   : > { %1717 = vrot.lane.b32.xlu1 %v4051_v49, %s3574_s10 }
 0x206   : > { %1827 = vrot.lane.b32.xlu1 %v4051_v49, %s3575_s16 }
 0x258   : > { %v1150_v11 = vpop.permute.xlu1 %1149 }
 0x259   : > { %v1155_v22 = vsel %vm1038_vm1, %v1150_v11, 0 }
 0x25c   : > { %v1147_v12 = vpop.permute.xlu1 %1146 }
 0x260   : > { %v1259_v14 = vpop.permute.xlu1 %1258 }
 0x264   : > { %v1371_v17 = vpop.permute.xlu1 %1370 }
 0x265   : > { %v1376_v20 = vsel %vm1038_vm1, %v1371_v17, 0 }
 0x268   : > { %v1369_v23 = vpop.permute.xlu1 %1368 }
 0x26c   : > { %v1607_v27 = vpop.permute.xlu1 %1606 }
 0x26d   : > { %v1612_v29 = vsel %vm1038_vm1, %v1607_v27, 0 }
 0x270   : > { %v1604_v28 = vpop.permute.xlu1 %1603 }
 0x274   : > { %v1718_v30 = vpop.permute.xlu1 %1717 }
 0x275   : > { %v1723_v31 = vsel %vm1038_vm1, %v1718_v30, 0 }
 0x278   : > { %v1828_v34 = vpop.permute.xlu1 %1827 }
 0x279   : > { %v1833_v37 = vsel %vm1038_vm1, %v1828_v34, 0 }
 0x2c1   : > { %v1079_v62 = vpop.f32.mrb[4].mxu1 }
 0x2c2   : > { %v1080_v63 = vadd.f32 %v4071_v61, %v1079_v62  ;;  %v2929_v0 = vpop.f32.mrb[5].mxu1 }
 0x2c3   : > { %v1082_v1 = vpop.f32.mrb[6].mxu1 }
 0x2c4   : > { %v2930_v2 = vpop.f32.mrb[7].mxu1  ;;  %v1086_v3 = vsel %vm1085_vm3, %v1080_v63, -inf }
 0x2c5   : > { %1087 = vmax.xlane.f32.xlu0 %v1086_v3 }
 0x352   : > { %v1088_v6 = vpop.xlane.xlu0 %1087 }
 0x353   : > { %v1089_v7 = vsub.f32 %v1080_v63, %v1088_v6 }
 0x355   : > { %v1090_v8 = vmul.f32 1.442695, %v1089_v7 }
 0x357   : > { %3252 = vpow2.f32 %v1090_v8 }
 0x361   : > { %v3253_v9 = vpop.eup %3252 }
 0x362   : > { %v1092_v10 = vsel %vm1085_vm3, %v3253_v9, 0.0 }
 0x363   : > { %1093 = vadd.xlane.f32.xlu0 %v1092_v10 }
 0x379   : > { %1260 = vrot.lane.b32.xlu0 %v1030_v44, %s3574_s10 }
 0x37d   : > { %1715 = vrot.lane.b32.xlu0 %v4055_v50, %s3574_s10 }
 0x381   : > { %1825 = vrot.lane.b32.xlu0 %v4055_v50, %s3575_s16 }
 0x3f0   : > { %v1094_v13 = vpop.xlane.xlu0 %1093 }
 0x3f1   : > { %3254 = vrcp.f32 %v1094_v13 }
 0x3f4   : > { %v1261_v15 = vpop.permute.xlu0 %1260 }
 0x3f5   : > { %v1266_v16 = vsel %vm1038_vm1, %v1261_v15, 0 }
 0x3f6   : > { %2950 = vmatpush3.bf16.xpose.msra.mxu0 %v1266_v16 }
 0x3f7   : > { %2961 = vmatprep.subr.bf16.mxu0 %v3571_v5 }
 0x3f8   : > { %v1716_v36 = vpop.permute.xlu0 %1715 }
 0x3fb   : > { %v3255_v18 = vpop.eup %3254 }
 0x3fc   : > { %v1096_v19 = vmul.f32 %v3255_v18, %v3253_v9  ;;  %v1826_v38 = vpop.permute.xlu0 %1825 }
 0x3fd   : > { %2952 = vmatmul.mubr.msk.bf16.vlgmr.msra.gmra.mrb[4].mxu0 %vm1038_vm1, %v1259_v14 }
 0x3fe   : > { %2962 = vmatpush3.bf16.xpose.msra.mxu0 %v1376_v20  ;;  %v1097_v21 = vpack.c.bf16 %v1096_v19, %v1096_v19  ;;  %2963 = vmatprep.mubr.msk.bf16.mxu0 %vm3572_vm0, %v3571_v5 }
 0x3ff   : > { %2973 = vmatprep.subr.bf16.mxu0 %v3571_v5 }
 0x400   : > { %2934 = vmatmul.mubr.msk.bf16.vlgmr.msra.gmra.mrb[8].mxu1 %vm1085_vm3, %v1097_v21 }
 0x401   : > { %2938 = vmatpush3.bf16.xpose.msra.mxu1 %v1155_v22  ;;  %2939 = vmatprep.mubr.msk.bf16.mxu1 %vm3572_vm0, %v3571_v5 }
 0x402   : > { %2943 = vmatprep.subr.bf16.mxu1 %v3571_v5 }
 0x405   : > { %2964 = vmatmul.mubr.msk.bf16.vlgmr.msra.gmra.mrb[8].mxu0 %vm1038_vm1, %v1369_v23 }
 0x406   : > { %2974 = vmatpush3.bf16.xpose.msra.mxu0 %v1502_v24  ;;  %2975 = vmatprep.mubr.msk.bf16.mxu0 %vm3572_vm0, %v3571_v5 }
 0x407   : > { %2985 = vmatprep.subr.bf16.mxu0 %v3571_v5 }
 0x408   : > { %2940 = vmatmul.mubr.msk.bf16.vlgmr.msra.gmra.mrb[12].mxu1 %vm1038_vm1, %v1147_v12 }
 0x409   : > { %2945 = vmatprep.mubr.msk.bf16.mxu1 %vm3572_vm0, %v3571_v5 }
 0x40d   : > { %2976 = vmatmul.mubr.msk.bf16.vlgmr.msra.gmra.mrb[12].mxu0 %vm1038_vm1, %v4055_v50 }
 0x40e   : > { %2986 = vmatpush3.bf16.xpose.msra.mxu0 %v1612_v29  ;;  %2987 = vmatprep.mubr.msk.bf16.mxu0 %vm3572_vm0, %v3571_v5 }
 0x40f   : > { %2997 = vmatprep.subr.bf16.mxu0 %v3571_v5 }
 0x415   : > { %2988 = vmatmul.mubr.msk.bf16.vlgmr.msra.gmra.mrb[16].mxu0 %vm1038_vm1, %v1604_v28 }
 0x416   : > { %2998 = vmatpush3.bf16.xpose.msra.mxu0 %v1723_v31  ;;  %2999 = vmatprep.mubr.msk.bf16.mxu0 %vm3572_vm0, %v3571_v5 }
 0x417   : > { %3009 = vmatprep.subr.bf16.mxu0 %v3571_v5 }
 0x41d   : > { %3000 = vmatmul.mubr.msk.bf16.vlgmr.msra.gmra.mrb[20].mxu0 %vm1038_vm1, %v1716_v36 }
 0x41e   : > { %3010 = vmatpush3.bf16.xpose.msra.mxu0 %v1833_v37  ;;  %3011 = vmatprep.mubr.msk.bf16.mxu0 %vm3572_vm0, %v3571_v5 }
 0x41f   : > { %3021 = vmatprep.subr.bf16.mxu0 %v3571_v5 }
 0x425   : > { %3012 = vmatmul.mubr.msk.bf16.vlgmr.msra.gmra.mrb[24].mxu0 %vm1038_vm1, %v1826_v38 }
 0x426   : > { %3037 = vmatprep.mubr.msk.bf16.mxu0 %vm3572_vm0, %v3571_v5 }
 0x4d0   : > { %v1302_v39 = vpop.f32.mrb[4].mxu0 }
 0x4d1   : > { %v1303_v40 = vadd.f32 %v4071_v61, %v1302_v39  ;;  %v2953_v41 = vpop.f32.mrb[5].mxu0 }
 0x4d2   : > { %v1305_v42 = vpop.f32.mrb[6].mxu0 }
 0x4d3   : > { %v4122_v43 = vpop.f32.mrb[8].mxu1  ;;  %v2954_v44 = vpop.f32.mrb[7].mxu0  ;;  %v1308_v45 = vsel %vm1085_vm3, %v1303_v40, -inf }
 0x4d4   : > { %1309 = vmax.xlane.f32.xlu0 %v1308_v45  ;;  %v2935_v46 = vpop.f32.mrb[9].mxu1 }
 0x4d5   : > { %v1142_v47 = vpop.f32.mrb[10].mxu1 }
 0x4d6   : > { %v2936_v48 = vpop.f32.mrb[11].mxu1 }
 0x4d8   : > { %v1412_v49 = vpop.f32.mrb[8].mxu0 }
 0x4d9   : > { %v1413_v50 = vadd.f32 %v4071_v61, %v1412_v49  ;;  %v2965_v51 = vpop.f32.mrb[9].mxu0 }
 0x4da   : > { %v1415_v52 = vpop.f32.mrb[10].mxu0 }
 0x4db   : > { %v1191_v53 = vpop.f32.mrb[12].mxu1  ;;  %v2966_v54 = vpop.f32.mrb[11].mxu0  ;;  %v1418_v55 = vsel %vm1085_vm3, %v1413_v50, -inf }
 0x4dc   : > { %v1192_v56 = vadd.f32 %v4071_v61, %v1191_v53  ;;  %1419 = vmax.xlane.f32.xlu0 %v1418_v55  ;;  %v2941_v59 = vpop.f32.mrb[13].mxu1 }
 0x4dd   : > { %v1194_v60 = vpop.f32.mrb[14].mxu1 }
 0x4de   : > { %v2942_v62 = vpop.f32.mrb[15].mxu1  ;;  %v1197_v63 = vsel %vm1085_vm3, %v1192_v56, -inf }
 0x4df   : > { %1198 = vmax.xlane.f32.xlu1 %v1197_v63 }
 0x4e0   : > { %v1538_v0 = vpop.f32.mrb[12].mxu0 }
 0x4e1   : > { %v1539_v1 = vadd.f32 %v4071_v61, %v1538_v0  ;;  %v2977_v2 = vpop.f32.mrb[13].mxu0 }
 0x4e2   : > { %v1541_v3 = vpop.f32.mrb[14].mxu0 }
 0x4e3   : > { %v2978_v6 = vpop.f32.mrb[15].mxu0  ;;  %v1544_v7 = vsel %vm1085_vm3, %v1539_v1, -inf }
 0x4e4   : > { %1545 = vmax.xlane.f32.xlu1 %v1544_v7  ;;  %v1497_v6 = vpack.c.bf16 %v4066_v58, %v4066_v58 }
 0x4e8   : > { %v1648_v8 = vpop.f32.mrb[16].mxu0 }
 0x4e9   : > { %v1649_v9 = vadd.f32 %v4071_v61, %v1648_v8  ;;  %v2989_v10 = vpop.f32.mrb[17].mxu0 }
 0x4ea   : > { %v1651_v11 = vpop.f32.mrb[18].mxu0 }
 0x4eb   : > { %v2990_v12 = vpop.f32.mrb[19].mxu0  ;;  %v1654_v13 = vsel %vm1085_vm3, %v1649_v9, -inf }
 0x4ec   : > { %1655 = vmax.xlane.f32.xlu0 %v1654_v13 }
 0x4f0   : > { %v1759_v14 = vpop.f32.mrb[20].mxu0 }
 0x4f1   : > { %v1760_v15 = vadd.f32 %v4071_v61, %v1759_v14  ;;  %v3001_v16 = vpop.f32.mrb[21].mxu0 }
 0x4f2   : > { %v1762_v17 = vpop.f32.mrb[22].mxu0 }
 0x4f3   : > { %v3002_v18 = vpop.f32.mrb[23].mxu0  ;;  %v1765_v19 = vsel %vm1085_vm3, %v1760_v15, -inf }
 0x4f4   : > { %1766 = vmax.xlane.f32.xlu1 %v1765_v19 }
 0x4f8   : > { %v1869_v20 = vpop.f32.mrb[24].mxu0 }
 0x4f9   : > { %v1870_v21 = vadd.f32 %v4071_v61, %v1869_v20  ;;  %v3013_v22 = vpop.f32.mrb[25].mxu0 }
 0x4fa   : > { %v1872_v23 = vpop.f32.mrb[26].mxu0 }
 0x4fb   : > { %v3014_v24 = vpop.f32.mrb[27].mxu0  ;;  %v1875_v27 = vsel %vm1085_vm3, %v1870_v21, -inf }
 0x4fc   : > { %1876 = vmax.xlane.f32.xlu0 %v1875_v27 }
 0x561   : > { %v1310_v28 = vpop.xlane.xlu0 %1309 }
 0x562   : > { %v1311_v29 = vsub.f32 %v1303_v40, %v1310_v28 }
 0x564   : > { %v1312_v30 = vmul.f32 1.442695, %v1311_v29  ;;  %v1560_v29 = vsel %vm1101_vm2, %v1497_v6, 0 }
 0x566   : > { %3256 = vpow2.f32 %v1312_v30 }
 0x569   : > { %v1420_v31 = vpop.xlane.xlu0 %1419 }
 0x56a   : > { %v1421_v34 = vsub.f32 %v1413_v50, %v1420_v31 }
 0x56c   : > { %v1422_v36 = vmul.f32 1.442695, %v1421_v34  ;;  %v1199_v37 = vpop.xlane.xlu1 %1198 }
 0x56d   : > { %v1200_v38 = vsub.f32 %v1192_v56, %v1199_v37 }
 0x56e   : > { %3258 = vpow2.f32 %v1422_v36 }
 0x56f   : > { %v1201_v39 = vmul.f32 1.442695, %v1200_v38 }
 0x570   : > { %v4137_v41 = vpop.eup %3256 }
 0x571   : > { %3260 = vpow2.f32 %v1201_v39  ;;  %v1546_v61 = vpop.xlane.xlu1 %1545  ;;  %v1314_v42 = vsel %vm1085_vm3, %v4137_v41, 0.0 }
 0x572   : > { %v1547_v44 = vsub.f32 %v1539_v1, %v1546_v61  ;;  %1315 = vadd.xlane.f32.xlu0 %v1314_v42 }
 0x574   : > { %v1548_v45 = vmul.f32 1.442695, %v1547_v44 }
 0x576   : > { %3262 = vpow2.f32 %v1548_v45 }
 0x578   : > { %v4141_v40 = vpop.eup %3258 }
 0x579   : > { %v1656_v46 = vpop.xlane.xlu0 %1655  ;;  %v1424_v47 = vsel %vm1085_vm3, %v4141_v40, 0.0 }
 0x57a   : > { %v1657_v48 = vsub.f32 %v1649_v9, %v1656_v46  ;;  %1425 = vadd.xlane.f32.xlu1 %v1424_v47 }
 0x57b   : > { %v3261_v49 = vpop.eup %3260 }
 0x57c   : > { %v1658_v50 = vmul.f32 1.442695, %v1657_v48  ;;  %v1203_v51 = vsel %vm1085_vm3, %v3261_v49, 0.0 }
 0x57e   : > { %3264 = vpow2.f32 %v1658_v50  ;;  %1204 = vadd.xlane.f32.xlu1 %v1203_v51 }
 0x580   : > { %v4146_v52 = vpop.eup %3262 }
 0x581   : > { %v1550_v53 = vsel %vm1085_vm3, %v4146_v52, 0.0  ;;  %v1767_v56 = vpop.xlane.xlu1 %1766 }
 0x582   : > { %1551 = vadd.xlane.f32.xlu0 %v1550_v53  ;;  %v1768_v59 = vsub.f32 %v1760_v15, %v1767_v56 }
 0x584   : > { %v1769_v60 = vmul.f32 1.442695, %v1768_v59 }
 0x586   : > { %3266 = vpow2.f32 %v1769_v60 }
 0x588   : > { %v4150_v54 = vpop.eup %3264 }
 0x589   : > { %v1660_v55 = vsel %vm1085_vm3, %v4150_v54, 0.0  ;;  %v1877_v62 = vpop.xlane.xlu0 %1876 }
 0x58a   : > { %1661 = vadd.xlane.f32.xlu0 %v1660_v55  ;;  %v1878_v63 = vsub.f32 %v1870_v21, %v1877_v62 }
 0x58c   : > { %v1879_v1 = vmul.f32 1.442695, %v1878_v63 }
 0x58e   : > { %3268 = vpow2.f32 %v1879_v1 }
 0x58f   : > { %1210 = vrot.lane.b32.xlu1 %v4064_v57, %s3573_s1 }
 0x590   : > { %v4160_v0 = vpop.eup %3266 }
 0x591   : > { %v1771_v2 = vsel %vm1085_vm3, %v4160_v0, 0.0 }
 0x598   : > { %v4164_v3 = vpop.eup %3268 }
 0x599   : > { %v1881_v7 = vsel %vm1085_vm3, %v4164_v3, 0.0 }
 0x5a0   : > { %1320 = vrot.lane.b32.xlu0 %v4064_v57, %s3574_s10 }
 0x5a4   : > { %1430 = vrot.lane.b32.xlu0 %v4064_v57, %s3575_s16 }
 0x5b3   : > { %1772 = vadd.xlane.f32.xlu1 %v1771_v2 }
 0x5c3   : > { %1882 = vadd.xlane.f32.xlu0 %v1881_v7 }
 0x5c4   : > { %1667 = vrot.lane.b32.xlu1 %v1497_v6, %s3573_s1 }
 0x5c8   : > { %1887 = vrot.lane.b32.xlu1 %v1497_v6, %s3575_s16 }
 0x5d9   : > { %1777 = vrot.lane.b32.xlu0 %v1497_v6, %s3574_s10 }
 0x5ff   : > { %v1316_v9 = vpop.xlane.xlu0 %1315 }
 0x607   : > { %v1426_v57 = vpop.xlane.xlu1 %1425 }
 0x60b   : > { %v1205_v8 = vpop.xlane.xlu1 %1204 }
 0x60c   : > { %3270 = vrcp.f32 %v1205_v8  ;;  %v3205_v8 = vld [vmem:[%s3978_s24 + $0x8] sm:$0xff]  }
 0x60d   : > { %3272 = vrcp.f32 %v1316_v9  ;;  %v3206_v9 = vld [vmem:[%s3978_s24 + $0x10] sm:$0xff]  }
 0x60e   : > { %3274 = vrcp.f32 %v1426_v57 }
 0x60f   : > { %v1211_v10 = vpop.permute.xlu1 %1210  ;;  %v1552_v58 = vpop.xlane.xlu0 %1551 }
 0x610   : > { %v1216_v11 = vsel %vm1101_vm2, %v1211_v10, 0  ;;  %3276 = vrcp.f32 %v1552_v58  ;;  %v3207_v10 = vld [vmem:[%s3978_s24 + $0x18] sm:$0xff]  }
 0x611   : > { %2944 = vmatpush3.bf16.msra.mxu1 %v1216_v11 }
 0x612   : > { %2955 = vmatprep.subr.bf16.mxu1 %v3571_v5 }
 0x616   : > { %v3271_v12 = vpop.eup %3270 }
 0x617   : > { %v1207_v13 = vmul.f32 %v3271_v12, %v3261_v49  ;;  %v1662_v14 = vpop.xlane.xlu0 %1661  ;;  %v3273_v16 = vpop.eup %3272 }
 0x618   : > { %v1318_v19 = vmul.f32 %v3273_v16, %v4137_v41  ;;  %v3275_v22 = vpop.eup %3274  ;;  %3278 = vrcp.f32 %v1662_v14  ;;  %v3209_v16 = vld [vmem:[%s3978_s24 + $0x28] sm:$0xff]  }
 0x619   : > { %v1208_v15 = vpack.c.bf16 %v1207_v13, %v1207_v13  ;;  %v1428_v24 = vmul.f32 %v3275_v22, %v4141_v40  ;;  %v3208_v13 = vld [vmem:[%s3978_s24 + $0x20] sm:$0xff]  }
 0x61a   : > { %v1319_v21 = vpack.c.bf16 %v1318_v19, %v1318_v19  ;;  %v3277_v28 = vpop.eup %3276 }
 0x61b   : > { %v1321_v17 = vpop.permute.xlu0 %1320  ;;  %2946 = vmatmul.mubr.msk.bf16.vlgmr.msra.gmra.mrb[16].mxu1 %vm1085_vm3, %v1208_v15  ;;  %v1429_v27 = vpack.c.bf16 %v1428_v24, %v1428_v24  ;;  %v1554_v30 = vmul.f32 %v3277_v28, %v4146_v52  ;;  %v3204_v52 = vld [vmem:[%s3978_s24] sm:$0xff]  }
 0x61c   : > { %v1326_v18 = vsel %vm1101_vm2, %v1321_v17, 0  ;;  %2957 = vmatprep.mubr.msk.bf16.mxu1 %vm3572_vm0, %v3571_v5  ;;  %3022 = vmatpush3.bf16.msra.mxu0 %v3204_v52  ;;  %v3210_v17 = vld [vmem:[%s3978_s24 + $0x30] sm:$0xff]  }
 0x61d   : > { %2956 = vmatpush3.bf16.msra.mxu1 %v1326_v18  ;;  %v1555_v31 = vpack.c.bf16 %v1554_v30, %v1554_v30  ;;  %3023 = vmatprep.subr.bf16.mxu0 %v3571_v5  ;;  %v3211_v18 = vld [vmem:[%s3978_s24 + $0x38] sm:$0xff]  }
 0x61e   : > { %2967 = vmatprep.subr.bf16.mxu1 %v3571_v5 }
 0x61f   : > { %v1431_v20 = vpop.permute.xlu0 %1430 }
 0x620   : > { %v1436_v23 = vsel %vm1101_vm2, %v1431_v20, 0  ;;  %3024 = vmatpush3.bf16.msra.mxu0 %v3205_v8  ;;  %v3223_v8 = vld [vmem:[%s3980_s3 + $0x34] ss:$8 sps:$4 sm:$0xff]  }
 0x621   : > { %3025 = vmatprep.subr.bf16.mxu0 %v3571_v5 }
 0x622   : > { %v3279_v34 = vpop.eup %3278 }
 0x623   : > { %2958 = vmatmul.mubr.msk.bf16.vlgmr.msra.gmra.mrb[20].mxu1 %vm1085_vm3, %v1319_v21  ;;  %v1664_v37 = vmul.f32 %v3279_v34, %v4150_v54 }
 0x624   : > { %2968 = vmatpush3.bf16.msra.mxu1 %v1436_v23  ;;  %2969 = vmatprep.mubr.msk.bf16.mxu1 %vm3572_vm0, %v3571_v5 }
 0x625   : > { %2979 = vmatprep.subr.bf16.mxu1 %v3571_v5  ;;  %v1665_v41 = vpack.c.bf16 %v1664_v37, %v1664_v37  ;;  %3026 = vmatpush3.bf16.msra.mxu0 %v3206_v9  ;;  %v3221_v9 = vld [vmem:[%s3980_s3 + $0x30] ss:$8 sps:$4 sm:$0xff]  }
 0x626   : > { %3027 = vmatprep.subr.bf16.mxu0 %v3571_v5 }
 0x629   : > { %3028 = vmatpush3.bf16.msra.mxu0 %v3207_v10  ;;  %v3226_v10 = vld [vmem:[%s3980_s3 + $0x44] ss:$8 sps:$4 sm:$0xff]  }
 0x62a   : > { %3029 = vmatprep.subr.bf16.mxu0 %v3571_v5 }
 0x62b   : > { %2970 = vmatmul.mubr.msk.bf16.vlgmr.msra.gmra.mrb[24].mxu1 %vm1085_vm3, %v1429_v27 }
 0x62c   : > { %2980 = vmatpush3.bf16.msra.mxu1 %v1560_v29  ;;  %2981 = vmatprep.mubr.msk.bf16.mxu1 %vm3572_vm0, %v3571_v5 }
 0x62d   : > { %2991 = vmatprep.subr.bf16.mxu1 %v3571_v5  ;;  %3030 = vmatpush3.bf16.msra.mxu0 %v3208_v13  ;;  %v3232_v13 = vld [vmem:[%s3980_s3 + $0x64] ss:$8 sps:$4 sm:$0xff]  }
 0x62e   : > { %3031 = vmatprep.subr.bf16.mxu0 %v3571_v5 }
 0x631   : > { %3032 = vmatpush3.bf16.msra.mxu0 %v3209_v16  ;;  %v3233_v16 = vld [vmem:[%s3980_s3 + $0x70] ss:$8 sps:$4 sm:$0xff]  }
 0x632   : > { %3033 = vmatprep.subr.bf16.mxu0 %v3571_v5 }
 0x633   : > { %2982 = vmatmul.mubr.msk.bf16.vlgmr.msra.gmra.mrb[28].mxu1 %vm1085_vm3, %v1555_v31 }
 0x634   : > { %2993 = vmatprep.mubr.msk.bf16.mxu1 %vm3572_vm0, %v3571_v5 }
 0x635   : > { %3034 = vmatpush3.bf16.msra.mxu0 %v3210_v17  ;;  %v3236_v17 = vld [vmem:[%s3982_s27 + $0x40] sm:$0xff]  }
 0x636   : > { %3035 = vmatprep.subr.bf16.mxu0 %v3571_v5 }
 0x639   : > { %3036 = vmatpush3.bf16.msra.mxu0 %v3211_v18  ;;  %v3237_v18 = vld [vmem:[%s3982_s27] sm:$0xff]  }
 0x63a   : > { %2883 = vmatprep.subr.bf16.mxu0 %v3236_v17 }
 0x640   : > { %v1773_v36 = vpop.xlane.xlu1 %1772 }
 0x641   : > { %3280 = vrcp.f32 %v1773_v36 }
 0x644   : > { %v1668_v38 = vpop.permute.xlu1 %1667 }
 0x645   : > { %v1673_v39 = vsel %vm1101_vm2, %v1668_v38, 0 }
 0x646   : > { %2992 = vmatpush3.bf16.msra.mxu1 %v1673_v39 }
 0x647   : > { %3003 = vmatprep.subr.bf16.mxu1 %v3571_v5 }
 0x648   : > { %v1888_v46 = vpop.permute.xlu1 %1887 }
 0x649   : > { %2994 = vmatmul.mubr.msk.bf16.vlgmr.msra.gmra.mrb[32].mxu1 %vm1085_vm3, %v1665_v41  ;;  %v1893_v48 = vsel %vm1101_vm2, %v1888_v46, 0 }
 0x64a   : > { %3005 = vmatprep.mubr.msk.bf16.mxu1 %vm3572_vm0, %v3571_v5 }
 0x64b   : > { %v3281_v61 = vpop.eup %3280 }
 0x64c   : > { %v1775_v44 = vmul.f32 %v3281_v61, %v4160_v0 }
 0x64e   : > { %v1776_v47 = vpack.c.bf16 %v1775_v44, %v1775_v44 }
 0x650   : > { %v1883_v42 = vpop.xlane.xlu0 %1882 }
 0x651   : > { %3282 = vrcp.f32 %v1883_v42 }
 0x654   : > { %v1778_v45 = vpop.permute.xlu0 %1777 }
 0x655   : > { %v1783_v40 = vsel %vm1101_vm2, %v1778_v45, 0 }
 0x656   : > { %3004 = vmatpush3.bf16.msra.mxu1 %v1783_v40 }
 0x657   : > { %3015 = vmatprep.subr.bf16.mxu1 %v3571_v5 }
 0x659   : > { %3006 = vmatmul.mubr.msk.bf16.vlgmr.msra.gmra.mrb[36].mxu1 %vm1085_vm3, %v1776_v47 }
 0x65a   : > { %3016 = vmatpush3.bf16.msra.mxu1 %v1893_v48  ;;  %3017 = vmatprep.mubr.msk.bf16.mxu1 %vm3572_vm0, %v3571_v5 }
 0x65b   : > { %v3283_v49 = vpop.eup %3282 }
 0x65c   : > { %v1885_v50 = vmul.f32 %v3283_v49, %v4164_v3  ;;  %v2780_v49 = vld [vmem:[%s4432_s4] ss:$0 sm:$0xff] }
 0x65e   : > { %v1886_v51 = vpack.c.bf16 %v1885_v50, %v1885_v50 }
 0x661   : > { %3018 = vmatmul.mubr.msk.bf16.vlgmr.msra.gmra.mrb[40].mxu1 %vm1085_vm3, %v1886_v51 }
 0x662   : > { %2247 = vmatprep.mubr.bf16.mxu1 %v3570_v4 }
 0x6ee   : > { %v1252_v53 = vpop.f32.mrb[16].mxu1 }
 0x6ef   : > { %v2947_v54 = vpop.f32.mrb[17].mxu1 }
 0x6f0   : > { %v1255_v55 = vpop.f32.mrb[18].mxu1 }
 0x6f1   : > { %v2948_v56 = vpop.f32.mrb[19].mxu1 }
 0x6f6   : > { %v1362_v59 = vpop.f32.mrb[20].mxu1 }
 0x6f7   : > { %v2959_v60 = vpop.f32.mrb[21].mxu1 }
 0x6f8   : > { %v1365_v62 = vpop.f32.mrb[22].mxu1  ;;  %v3214_v60 = vld [vmem:[%s3980_s3 + $0x4] ss:$8 sps:$4 sm:$0xff]  }
 0x6f9   : > { %v2960_v63 = vpop.f32.mrb[23].mxu1  ;;  %v3217_v62 = vld [vmem:[%s3980_s3 + $0x14] ss:$8 sps:$4 sm:$0xff]   ;;  %2215 = vmatprep.subr.bf16.mxu1 %v3214_v60 }
 0x6fa   : > { %v3215_v63 = vld [vmem:[%s3980_s3 + $0x10] ss:$8 sps:$4 sm:$0xff]  }
 0x6fe   : > { %v1472_v0 = vpop.f32.mrb[24].mxu1 }
 0x6ff   : > { %v2971_v1 = vpop.f32.mrb[25].mxu1 }
 0x700   : > { %v1475_v2 = vpop.f32.mrb[26].mxu1 }
 0x701   : > { %v2972_v3 = vpop.f32.mrb[27].mxu1 }
 0x706   : > { %v1596_v4 = vpop.f32.mrb[28].mxu1 }
 0x707   : > { %v2983_v6 = vpop.f32.mrb[29].mxu1 }
 0x708   : > { %v1599_v7 = vpop.f32.mrb[30].mxu1 }
 0x709   : > { %v2984_v57 = vpop.f32.mrb[31].mxu1  ;;  %v3220_v7 = vld [vmem:[%s3980_s3 + $0x24] ss:$8 sps:$4 sm:$0xff]  }
 0x70a   : > { %v3218_v57 = vld [vmem:[%s3980_s3 + $0x20] ss:$8 sps:$4 sm:$0xff]  }
 0x71c   : > { %v1709_v11 = vpop.f32.mrb[32].mxu1 }
 0x71d   : > { %v3157_v58 = vpack.i.bf16 %v1709_v11, %v1252_v53  ;;  %v2995_v12 = vpop.f32.mrb[33].mxu1  ;;  %v3224_v11 = vld [vmem:[%s3980_s3 + $0x40] ss:$8 sps:$4 sm:$0xff]  }
 0x71e   : > { %v1712_v14 = vpop.f32.mrb[34].mxu1  ;;  %v3227_v12 = vld [vmem:[%s3980_s3 + $0x50] ss:$8 sps:$4 sm:$0xff]  }
 0x71f   : > { %3158 = vrot.lane.b32.xlu1 %v3157_v58, %s3575_s16  ;;  %v2996_v15 = vpop.f32.mrb[35].mxu1  ;;  %v3229_v58 = vld [vmem:[%s3980_s3 + $0x54] ss:$8 sps:$4 sm:$0xff]   ;;  %v3230_v14 = vld [vmem:[%s3980_s3 + $0x60] ss:$8 sps:$4 sm:$0xff]  }
 0x720   : > { %v3235_v15 = vld [vmem:[%s3980_s3 + $0x74] ss:$8 sps:$4 sm:$0xff]  }
 0x72c   : > { %v1819_v19 = vpop.f32.mrb[36].mxu1 }
 0x72d   : > { %v3162_v20 = vpack.i.bf16 %v1819_v19, %v1362_v59  ;;  %v3007_v21 = vpop.f32.mrb[37].mxu1  ;;  %v3212_v59 = vld [vmem:[%s3980_s3] ss:$8 sps:$4 sm:$0xff]  }
 0x72e   : > { %v1822_v22 = vpop.f32.mrb[38].mxu1  ;;  %2216 = vmatpush1.bf16.msra.mxu1 %v3212_v59  ;;  %v3238_v19 = vld [vmem:[%s3982_s27 + $0x48] sm:$0xff]   ;;  %v3240_v21 = vld [vmem:[%s3982_s27 + $0x50] sm:$0xff]  }
 0x72f   : > { %3163 = vrot.lane.b32.xlu1 %v3162_v20, %s3574_s10  ;;  %v3008_v23 = vpop.f32.mrb[39].mxu1  ;;  %2217 = vmatprep.subr.bf16.mxu1 %v3217_v62  ;;  %v3239_v20 = vld [vmem:[%s3982_s27 + $0x8] sm:$0xff]   ;;  %v3241_v22 = vld [vmem:[%s3982_s27 + $0x10] sm:$0xff]  }
 0x730   : > { %v3242_v23 = vld [vmem:[%s3982_s27 + $0x58] sm:$0xff]  }
 0x732   : > { %2218 = vmatpush1.bf16.msra.mxu1 %v3215_v63 }
 0x733   : > { %2219 = vmatprep.subr.bf16.mxu1 %v3220_v7 }
 0x734   : > { %v1929_v24 = vpop.f32.mrb[40].mxu1 }
 0x735   : > { %v3167_v27 = vpack.i.bf16 %v1929_v24, %v1472_v0  ;;  %v3019_v28 = vpop.f32.mrb[41].mxu1  ;;  %v3243_v24 = vld [vmem:[%s3982_s27 + $0x18] sm:$0xff]  }
 0x736   : > { %v1932_v29 = vpop.f32.mrb[42].mxu1  ;;  %2220 = vmatpush1.bf16.msra.mxu1 %v3218_v57  ;;  %v3245_v28 = vld [vmem:[%s3982_s27 + $0x20] sm:$0xff]  }
 0x737   : > { %3168 = vrot.lane.b32.xlu1 %v3167_v27, %s3573_s1  ;;  %v3020_v30 = vpop.f32.mrb[43].mxu1  ;;  %2221 = vmatprep.subr.bf16.mxu1 %v3223_v8  ;;  %v3244_v27 = vld [vmem:[%s3982_s27 + $0x60] sm:$0xff]   ;;  %v3246_v29 = vld [vmem:[%s3982_s27 + $0x68] sm:$0xff]   ;;  %s3576_s1 = smov [#allocation11]  }
 0x738   : > { %s2493_s10 = sshll.u32 %s3576_s1, 4  ;;  %s2494_s10 = int_to_ptr.vmem [resolvable:$true] %s2493_s10 }
 0x739   : > { %p3475_p11 = scmp.lt.s32.totalorder %s2494_s10, %s2494_s10 }
 0x73a   : > { %2222 = vmatpush1.bf16.msra.mxu1 %v3221_v9 }
 0x73b   : > { %2223 = vmatprep.subr.bf16.mxu1 %v3226_v10 }
 0x73e   : > { %2224 = vmatpush1.bf16.msra.mxu1 %v3224_v11 }
 0x73f   : > { %2225 = vmatprep.subr.bf16.mxu1 %v3229_v58 }
 0x742   : > { %2226 = vmatpush1.bf16.msra.mxu1 %v3227_v12 }
 0x743   : > { %2227 = vmatprep.subr.bf16.mxu1 %v3232_v13 }
 0x746   : > { %2228 = vmatpush1.bf16.msra.mxu1 %v3230_v14 }
 0x747   : > { %2229 = vmatprep.subr.bf16.mxu1 %v3235_v15 }
 0x74a   : > { %2230 = vmatpush1.bf16.msra.mxu1 %v3233_v16 }
 0x791   : > { %v3159_v31 = vpop.permute.xlu1 %3158 }
 0x792   : > { %v3161_v36 = vunpack.i.h.bf16 %v3159_v31  ;;  %v3160_v5 = vunpack.i.l.bf16 %v3159_v31 }
 0x794   : > { %v1947_v41 = vsel %vm1038_vm1, %v1596_v4, %v3161_v36  ;;  %v1490_v61 = vsel %vm1038_vm1, %v4122_v43, %v3160_v5 }
 0x7a1   : > { %v3164_v34 = vpop.permute.xlu1 %3163 }
 0x7a2   : > { %v3166_v37 = vunpack.i.h.bf16 %v3164_v34  ;;  %v3165_v38 = vunpack.i.l.bf16 %v3164_v34 }
 0x7a4   : > { %v1948_v45 = vsel %vm1491_vm4, %v1947_v41, %v3166_v37  ;;  %v1492_v40 = vsel %vm1491_vm4, %v1490_v61, %v3165_v38  ;;  %v2789_v41 = vld [vmem:[%s4434_s6] ss:$0 sm:$0xff] }
 0x7a9   : > { %v3169_v39 = vpop.permute.xlu1 %3168 }
 0x7aa   : > { %v3171_v42 = vunpack.i.h.bf16 %v3169_v39  ;;  %v3170_v44 = vunpack.i.l.bf16 %v3169_v39 }
 0x7ac   : > { %v1949_v46 = vsel %vm1493_vm5, %v1948_v45, %v3171_v42  ;;  %v1494_v47 = vsel %vm1493_vm5, %v1492_v40, %v3170_v44  ;;  %v2790_v45 = vld [vmem:[%s4436_s26] ss:$0 sm:$0xff] }
 0x7ad   : > { %v1966_v48 = vpack.c.bf16 %v1949_v46, %v1494_v47 }
 0x7af   : > { %3038 = vmatmul.mubr.bf16.vlgmr.msra.gmra.mrb[28].mxu0 %v1966_v48 }
 0x7b0   : > { %2884 = vmatpush3.bf16.msra.mxu0 %v3237_v18 }
 0x7b1   : > { %2885 = vmatprep.subr.bf16.mxu0 %v3238_v19 }
 0x7b4   : > { %2886 = vmatpush3.bf16.msra.mxu0 %v3239_v20 }
 0x7b5   : > { %2887 = vmatprep.subr.bf16.mxu0 %v3240_v21 }
 0x7b8   : > { %2888 = vmatpush3.bf16.msra.mxu0 %v3241_v22 }
 0x7b9   : > { %2889 = vmatprep.subr.bf16.mxu0 %v3242_v23 }
 0x7bc   : > { %2890 = vmatpush3.bf16.msra.mxu0 %v3243_v24 }
 0x7bd   : > { %2891 = vmatprep.subr.bf16.mxu0 %v3244_v27 }
 0x7c0   : > { %2892 = vmatpush3.bf16.msra.mxu0 %v3245_v28 }
 0x7c1   : > { %2893 = vmatprep.subr.bf16.mxu0 %v3246_v29 }
 0x882   : > { %v2056_v50 = vpop.f32.mrb[28].mxu0 }
 0x883   : > { %v2057_v51 = vadd.f32 %v2780_v49, %v2056_v50  ;;  %v3039_v43 = vpop.f32.mrb[29].mxu0  ;;  %v3248_v50 = vld [vmem:[%s3982_s27 + $0x70] sm:$0xff]  }
 0x884   : > { %v2059_v52 = vpop.f32.mrb[30].mxu0  ;;  %v3250_v43 = vld [vmem:[%s3982_s27 + $0x78] sm:$0xff]  }
 0x885   : > { %v2060_v53 = vadd.f32 %v2780_v49, %v2059_v52  ;;  %v3040_v54 = vpop.f32.mrb[31].mxu0  ;;  %v2063_v55 = vadd.f32 %v2057_v51, %v4011_v25  ;;  %v3247_v49 = vld [vmem:[%s3982_s27 + $0x28] sm:$0xff]   ;;  %v3249_v51 = vld [vmem:[%s3982_s27 + $0x30] sm:$0xff]   ;;  %v3251_v52 = vld [vmem:[%s3982_s27 + $0x38] sm:$0xff]  }
 0x886   : > { %2894 = vmatpush3.bf16.msra.mxu0 %v3247_v49 }
 0x887   : > { %2065 = vadd.xlane.f32.xlu0 %v2063_v55  ;;  %v2064_v56 = vadd.f32 %v2060_v53, %v4013_v26  ;;  %2895 = vmatprep.subr.bf16.mxu0 %v3248_v50  ;;  %v2123_v53 = vld [vmem:[%s3964_s17] sm:$0x3] }
 0x888   : > { %v2128_v54 = vrot.slane %v2123_v53, %v803_v35 }
 0x889   : > { %2067 = vadd.xlane.f32.xlu1 %v2064_v56 }
 0x88a   : > { %2896 = vmatpush3.bf16.msra.mxu0 %v3249_v51 }
 0x88b   : > { %2897 = vmatprep.subr.bf16.mxu0 %v3250_v43 }
 0x88e   : > { %2898 = vmatpush3.bf16.msra.mxu0 %v3251_v52 }
 0x914   : > { %v2066_v0 = vpop.xlane.xlu0 %2065 }
 0x915   : > { %v2070_v1 = vmul.f32 0.0078125, %v2066_v0 }
 0x916   : > { %v2068_v2 = vpop.xlane.xlu1 %2067 }
 0x917   : > { %v2072_v25 = vsub.f32 %v2063_v55, %v2070_v1  ;;  %v2071_v26 = vmul.f32 0.0078125, %v2068_v2  ;;  %v2132_v55 = vrot.slane %v2123_v53, %v807_v33 }
 0x919   : > { %v4244_v3 = vsub.f32 %v2064_v56, %v2071_v26  ;;  %v2074_v4 = vmul.f32 %v2072_v25, %v2072_v25 }
 0x91b   : > { %2076 = vadd.xlane.f32.xlu0 %v2074_v4  ;;  %v2075_v6 = vmul.f32 %v4244_v3, %v4244_v3 }
 0x91f   : > { %2078 = vadd.xlane.f32.xlu0 %v2075_v6 }
 0x9a8   : > { %v2077_v30 = vpop.xlane.xlu0 %2076 }
 0x9a9   : > { %v2080_v31 = vmul.f32 0.0078125, %v2077_v30 }
 0x9ab   : > { %v2082_v34 = vadd.f32 1e-05, %v2080_v31  ;;  %v2824_v31 = vld [vmem:[%s750_s28] ss:$0 sm:$0xff]  ;;  %s3468_s28 = scalar_lea.vmem %s2494_s10, 256 }
 0x9ac   : > { %v2079_v36 = vpop.xlane.xlu0 %2078  ;;  %p3469_p3 = scmp.ne.s32.totalorder %s2494_s10, %s3468_s28  ;;  %p3476_p5 = scmp.lt.s32.totalorder %s3468_s28, %s3468_s28 }
 0x9ad   : > { %3284 = vrsqrt.f32 %v2082_v34  ;;  %v2081_v5 = vmul.f32 0.0078125, %v2079_v36 }
 0x9ae   : > { %p3470_p12 = pnand %p3469_p3, %p3090_p8  ;;  %p3477_p13 = por %p3476_p5, %p3475_p11 }
 0x9af   : > { %v2083_v37 = vadd.f32 1e-05, %v2081_v5  ;;  %v2825_v5 = vld [vmem:[%s753_s11] ss:$0 sm:$0xff] }
 0x9b0   : > { %p3471_p4 = pneg %p3470_p12 }
 0x9b1   : > { %3286 = vrsqrt.f32 %v2083_v37 }
 0x9b2   : > { %p3478_p0 = pnand %p3477_p13, %p3471_p4 }
 0x9b7   : > { %v3285_v38 = vpop.eup %3284 }
 0x9b8   : > { %v2086_v39 = vmul.f32 %v3285_v38, %v2072_v25 }
 0x9ba   : > { %v2095_v44 = vmul.f32 %v2789_v41, %v2086_v39 }
 0x9bb   : > { %v3287_v61 = vpop.eup %3286 }
 0x9bc   : > { %v2087_v42 = vmul.f32 %v3287_v61, %v4244_v3  ;;  %v2104_v46 = vadd.f32 %v2790_v45, %v2095_v44 }
 0x9be   : > { %v2096_v40 = vmul.f32 %v2789_v41, %v2087_v42 }
 0x9c0   : > { %v2105_v47 = vadd.f32 %v2790_v45, %v2096_v40 }
 0x9c2   : > { %v2122_v48 = vpack.c.bf16 %v2105_v47, %v2104_v46 }
 0x9c4   : > { %2248 = vmatmul.mubr.bf16.vlgmr.msra.gmra.mrb[44].mxu1 %v2122_v48 }
 0xa97   : > { %v2249_v56 = vpop.f32.mrb[44].mxu1 }
 0xa98   : > { %v2250_v59 = vadd.f32 %v2249_v56, %v2128_v54  ;;  %v2251_v60 = vpop.f32.mrb[45].mxu1 }
 0xa99   : > { %v2252_v62 = vadd.f32 %v2251_v60, %v2132_v55  ;;  %v2253_v63 = vpop.f32.mrb[46].mxu1 }
 0xa9a   : > { %v2254_v0 = vadd.f32 %v2253_v63, %v2128_v54  ;;  %v2255_v1 = vpop.f32.mrb[47].mxu1  ;;  %v2258_v25 = vmax.f32 %v2250_v59, 0.0 }
 0xa9b   : > { %v2256_v2 = vadd.f32 %v2255_v1, %v2132_v55  ;;  %v2259_v3 = vmax.f32 %v2252_v62, 0.0 }
 0xa9c   : > { %v2260_v26 = vmax.f32 %v2254_v0, 0.0 }
 0xa9d   : > { %v2261_v4 = vmax.f32 %v2256_v2, 0.0 }
 0xa9e   : > { %v2294_v6 = vpack.c.bf16 %v2260_v26, %v2258_v25 }
 0xa9f   : > { %v2295_v7 = vpack.c.bf16 %v2261_v4, %v2259_v3 }
 0xaa1   : > { %2431 = vmatprep.mubr.bf16.mxu0 %v2295_v7 }
 0xaa2   : > { %2432 = vmatmul.mubr.bf16.vlgmr.msra.gmra.mrb[32].mxu0 %v2294_v6 }
 0xb75   : > { %v2899_v35 = vpop.f32.mrb[32].mxu0 }
 0xb76   : > { %v2900_v33 = vpop.f32.mrb[33].mxu0 }
 0xb77   : > { %v2901_v57 = vadd.f32 %v2900_v33, %v2899_v35  ;;  %v2902_v8 = vpop.f32.mrb[34].mxu0 }
 0xb78   : > { %v2903_v9 = vpop.f32.mrb[35].mxu0 }
 0xb79   : > { %v2434_v10 = vadd.f32 %v2901_v57, %v2807_v32  ;;  %v2904_v11 = vadd.f32 %v2903_v9, %v2902_v8 }
 0xb7b   : > { %v2437_v58 = vadd.f32 %v2904_v11, %v2807_v32  ;;  %v2440_v12 = vadd.f32 %v2434_v10, %v2104_v46 }
 0xb7d   : > { %2442 = vadd.xlane.f32.xlu1 %v2440_v12  ;;  %v2441_v13 = vadd.f32 %v2437_v58, %v2105_v47 }
 0xb7f   : > { %2444 = vadd.xlane.f32.xlu0 %v2441_v13 }
 0xc0a   : > { %v2443_v14 = vpop.xlane.xlu1 %2442 }
 0xc0b   : > { %v2446_v15 = vmul.f32 0.0078125, %v2443_v14 }
 0xc0c   : > { %v2445_v16 = vpop.xlane.xlu0 %2444 }
 0xc0d   : > { %v2448_v17 = vsub.f32 %v2440_v12, %v2446_v15  ;;  %v2447_v18 = vmul.f32 0.0078125, %v2445_v16 }
 0xc0f   : > { %v2449_v19 = vsub.f32 %v2441_v13, %v2447_v18  ;;  %v2450_v20 = vmul.f32 %v2448_v17, %v2448_v17 }
 0xc11   : > { %2452 = vadd.xlane.f32.xlu1 %v2450_v20  ;;  %v2451_v21 = vmul.f32 %v2449_v19, %v2449_v19 }
 0xc13   : > { %2454 = vadd.xlane.f32.xlu0 %v2451_v21 }
 0xc9e   : > { %v2453_v22 = vpop.xlane.xlu1 %2452 }
 0xc9f   : > { %v2456_v23 = vmul.f32 0.0078125, %v2453_v22 }
 0xca0   : > { %v2455_v24 = vpop.xlane.xlu0 %2454 }
 0xca1   : > { %v2458_v27 = vadd.f32 1e-05, %v2456_v23  ;;  %v2457_v28 = vmul.f32 0.0078125, %v2455_v24 }
 0xca3   : > { %3288 = vrsqrt.f32 %v2458_v27  ;;  %v2459_v29 = vadd.f32 1e-05, %v2457_v28 }
 0xca5   : > { %3290 = vrsqrt.f32 %v2459_v29 }
 0xcad   : > { %v3289_v30 = vpop.eup %3288 }
 0xcae   : > { %v2462_v34 = vmul.f32 %v3289_v30, %v2448_v17 }
 0xcaf   : > { %v3291_v36 = vpop.eup %3290 }
 0xcb0   : > { %v2463_v37 = vmul.f32 %v3291_v36, %v2449_v19  ;;  %v2471_v38 = vmul.f32 %v2824_v31, %v2462_v34 }
 0xcb2   : > { %v2472_v39 = vmul.f32 %v2824_v31, %v2463_v37  ;;  %v2480_v41 = vadd.f32 %v2825_v5, %v2471_v38 }
 0xcb4   : > { %v2481_v61 = vadd.f32 %v2825_v5, %v2472_v39  ;;  %2482 = vst [vmem:[#allocation11] sm:$0xff] %v2480_v41 }
 0xcb6   : > { %2483 = vst [vmem:[#allocation11 + $0x8] sm:$0xff] %v2481_v61 }
 0xcb7   : > { %3481 = shalt.err (!%p3478_p0)
}
 0xcb8   : > { %s4440_s16 = sld [smem:[#allocation32_spill]] }
 0xcbe   : > { %s4441_s12 = smov %s4440_s16  ;;  %s3482_s8 = scalar_lea.hbm %s4440_s16, 256 }
 0xcbf   : > { %p3483_p1 = scmp.ne.s32.totalorder %s4441_s12, %s3482_s8  ;;  %p3488_p2 = scmp.lt.u32.totalorder %s3482_s8, %s4441_s12 }
 0xcc1   : > { %p3484_p7 = pnand %p3483_p1, %p3090_p8 }
 0xcc3   : > { %p3485_p9 = pneg %p3484_p7 }
 0xcc5   : > { %p3490_p10 = pnand %p3488_p2, %p3485_p9 }
 0xcc7   : > { %3493 = shalt.err (!%p3490_p10)
}
 0xcc8   : > { %s3577_s6 = smov 128   ;;  %s3578_s29 = smov 8  }
 0xcc9   : > { %3062 = dma.vmem_to_hbm [thread:$0]  (%p3090_p8), %s2494_s10, 256, %s4441_s12, [#allocation4], %s3577_s6, %s3577_s6, %s3578_s29  }
 0xcca   : > { %3531 = dma.done.wait (%p3090_p8), [#allocation4], 256  }
 0xccb   : > { %3533 = vsyncadd (%p3090_p8), [#allocation4], 4294967040 }
 0xccc PF: > { %s27_s18 = sadd.s32 1, %s3556_s18   ;;  %s4442_s26 = sld [smem:[#allocation18_spill]] }
 0xccd   : > { %p24_p6 = scmp.ge.s32.totalorder %s27_s18, 4   ;;  %s4443_s16 = sld [smem:[#allocation16_spill]] }
 0xcce   : > { %s4444_s17 = sld [smem:[#allocation17_spill]]  ;;  %s4445_s29 = smov %s3540_s30 }
 0xccf   : > { %s4446_s30 = smov %s3544_s15  ;;  %26 = sbr.rel (!%p24_p6) target bundleno = 20 (0x14), region = 183 }
 0xcd2   : > { %s4447_s15 = smov %s4442_s26 }
 0xcd6   :  { %2509 = vsyncpa [#allocation3], 1 }
 0xcd7   :  { %2511 = vsyncpa [#allocation3 + $0x1], 1 }
 0xcd8   :  { %2512 = vsyncpa [#allocation6], 1 }
 0xcd9   :  { %2513 = vsyncpa [#allocation4], 1 }
 0xcda   :  { %2515 = vsyncpa [#allocation4 + $0x1], 1 }

</bundles_post_ra>
